<compile_context>
chip_gen: v6e
topology: v6e:2x2x1
jax: 0.10.0
libtpu: 0.0.40
codegen_flags: <defaults>
</compile_context>

<pallas_src>
import functools
import math

import jax
import jax.numpy as jnp
import numpy as np
from jax.experimental import pallas as pl
from jax.experimental.pallas import tpu as pltpu

NEG_BIG = -1e30  # finite "-inf" so (-inf) - (-inf) never produces NaN


def gat_kernel(xi_ref, xk_ref, wu_ref, wv_ref, adj_ref, out_ref,
               m_sc, l_sc, acc_sc):
    k = pl.program_id(1)

    @pl.when(k == 0)
    def _init():
        m_sc[...] = jnp.full_like(m_sc, NEG_BIG)
        l_sc[...] = jnp.zeros_like(l_sc)
        acc_sc[...] = jnp.zeros_like(acc_sc)

    xi = xi_ref[...]                                   # [tm, Hp] target-row features
    xk = xk_ref[...]                                   # [tk, Hp] source-row features

    # Fused per-node attention scores, all on the MXU:
    #   U = [a_i(x_i), 1]  (the "1" comes from the packed ones-lane at column H)
    #   V = [1, a_j(x_j)]
    #   e = U @ V^T  ->  e[i, j] = a_i(x_i) + a_j(x_j)   (no transposes, no x^T copy)
    u = jnp.dot(xi, wu_ref[...], preferred_element_type=jnp.float32)   # [tm, 2]
    v = jnp.dot(xk, wv_ref[...], preferred_element_type=jnp.float32)   # [tk, 2]
    e = jax.lax.dot_general(u, v, (((1,), (1,)), ((), ())),
                            preferred_element_type=jnp.float32)        # [tm, tk]

    adj = adj_ref[...].astype(jnp.float32)             # [tm, tk] edge multiplicities
    # leaky_relu(slope=0.01) as a single max, neighborhood mask folded in with
    # one select (keeps the VALU load per adjacency element minimal).
    e = jnp.where(adj > 0.0, jnp.maximum(e, 0.01 * e), NEG_BIG)

    # online (streaming) segment softmax over source-column tiles
    m_prev = m_sc[...]
    m_new = jnp.maximum(m_prev, jnp.max(e, axis=1, keepdims=True))      # [tm, 1]
    scale = jnp.exp(m_prev - m_new)                                     # 1 while row unseen
    p = adj * jnp.exp(e - m_new)                                        # duplicates count-weighted
    l_sc[...] = scale * l_sc[...] + jnp.sum(p, axis=1, keepdims=True)
    acc_sc[...] = scale * acc_sc[...] + jnp.dot(p, xk,
                                                preferred_element_type=jnp.float32)
    m_sc[...] = m_new

    @pl.when(k == pl.num_programs(1) - 1)
    def _finalize():
        # EUP approx reciprocal keeps the divide off the VALU path; one Newton
        # step restores ~f32 accuracy (self-loop guarantees l > 0).
        l = l_sc[...]
        inv = pl.reciprocal(l, approx=True)
        inv = inv * (2.0 - l * inv)
        out_ref[...] = jnp.maximum(acc_sc[...] * inv, 0.0).astype(out_ref.dtype)


def _round_up(a, b):
    return (a + b - 1) // b * b


@functools.partial(jax.jit, static_argnames=("tm", "tk"))
def gat_forward(x, edge_index, w_i, w_j, *, tm=256, tk=2048):
    """GAT forward.

    x: [N, H] f32; edge_index: [2, E] int32 (row 0 = source j, row 1 = target i);
    w_i / w_j: [1, H] weights of the a_i / a_j Linear(hidden, 1, bias=False) layers.
    tm: target-row tile (power of two, multiple of 16);
    tk: source-column tile (power of two, multiple of 128).
    Defaults sized for v7x's 64 MiB VMEM; they also fit v5e/v6e comfortably.
    """
    N, H = x.shape
    Hp = _round_up(H + 1, 128)          # lane-dense features, +1 spare lane for the constant 1
    n128 = _round_up(N, 128)
    tm = min(tm, n128)
    tk = min(tk, n128)
    Np = _round_up(N, tm * tk // math.gcd(tm, tk))

    # Padded, lane-dense features; column H is a constant 1 used to express the
    # "+ a_j(x_j)" broadcast as a single MXU dot_general.
    x_p = jnp.zeros((Np, Hp), jnp.float32).at[:N, :H].set(x)
    x_p = x_p.at[:, H].set(1.0)

    wu = jnp.zeros((Hp, 2), jnp.float32)
    wu = wu.at[:H, 0].set(w_i.reshape(-1))   # a_i weights
    wu = wu.at[H, 1].set(1.0)                # picks up the ones-lane
    wv = jnp.zeros((Hp, 2), jnp.float32)
    wv = wv.at[H, 0].set(1.0)
    wv = wv.at[:H, 1].set(w_j.reshape(-1))   # a_j weights

    # Dense multiplicity matrix with add_remaining_self_loops semantics: existing
    # self-loops dropped, exactly one self-loop per node (also on padded nodes, so
    # every row's denominator is nonzero and padded rows stay finite).  Built and
    # streamed in bf16: small integer counts are exact, and it halves both the
    # one-time materialization traffic and the dominant O(N^2) kernel stream.
    # TODO(synk): for large sparse graphs, replace the dense O(N^2) adjacency with
    # CSR offsets/column indices via PrefetchScalarGridSpec scalar prefetch.
    src = edge_index[0].astype(jnp.int32)
    dst = edge_index[1].astype(jnp.int32)
    non_loop = (src != dst).astype(jnp.bfloat16)
    adj = jnp.zeros((Np, Np), jnp.bfloat16).at[dst, src].add(non_loop)
    diag = jnp.arange(Np)
    adj = adj.at[diag, diag].set(1.0)

    grid = (Np // tm, Np // tk)
    out = pl.pallas_call(
        gat_kernel,
        out_shape=jax.ShapeDtypeStruct((Np, Hp), jnp.float32),
        grid_spec=pltpu.PrefetchScalarGridSpec(
            num_scalar_prefetch=0,
            grid=grid,
            in_specs=[
                pl.BlockSpec((tm, Hp), lambda i, k: (i, 0)),   # target-row features
                pl.BlockSpec((tk, Hp), lambda i, k: (k, 0)),   # source-row features
                pl.BlockSpec((Hp, 2), lambda i, k: (0, 0)),    # fused a_i weights + ones pick
                pl.BlockSpec((Hp, 2), lambda i, k: (0, 0)),    # ones pick + fused a_j weights
                pl.BlockSpec((tm, tk), lambda i, k: (i, k)),   # adjacency tile (bf16)
            ],
            out_specs=pl.BlockSpec((tm, Hp), lambda i, k: (i, 0)),
            scratch_shapes=[
                pltpu.VMEM((tm, 1), jnp.float32),    # running max
                pltpu.VMEM((tm, 1), jnp.float32),    # running denominator
                pltpu.VMEM((tm, Hp), jnp.float32),   # running accumulator
            ],
        ),
        compiler_params=pltpu.CompilerParams(
            # Row tiles split across TensorCores (v7x has 2 TCs); reduction axis
            # last and "arbitrary" because the output block is revisited across k.
            dimension_semantics=("parallel", "arbitrary"),
            vmem_limit_bytes=32 * 1024 * 1024,
        ),
    )(x_p, x_p, wu, wv, adj)
    return out[:N, :H]


def _ref_numpy(x, edge_index, w_i, w_j):
    """Edge-list reference that mirrors the PyTorch forward exactly."""
    x = np.asarray(x, np.float32)
    ei = np.asarray(edge_index)
    N = x.shape[0]
    row, col = ei[0], ei[1]                       # row = source j, col = target i
    mask = row != col
    row = np.concatenate([row[mask], np.arange(N)])
    col = np.concatenate([col[mask], np.arange(N)])
    s_i = x @ np.asarray(w_i, np.float32).reshape(-1)   # a_i(x)
    s_j = x @ np.asarray(w_j, np.float32).reshape(-1)   # a_j(x)
    e = s_i[col] + s_j[row]
    e = np.where(e >= 0, e, 0.01 * e).astype(np.float32)
    m = np.full(N, -np.inf, np.float32)
    np.maximum.at(m, col, e)
    p = np.exp(e - m[col])
    den = np.zeros(N, np.float32)
    np.add.at(den, col, p)
    alpha = p / den[col]
    out = np.zeros_like(x)
    np.add.at(out, col, alpha[:, None] * x[row])
    return np.maximum(out, 0.0)


if __name__ == "__main__":
    key = jax.random.PRNGKey(0)
    k_x, k_e, k_wi, k_wj, k_wr = jax.random.split(key, 5)

    N, H, E = 512, 32, 2048
    x = jax.random.normal(k_x, (N, H), jnp.float32)
    edge_index = jax.random.randint(k_e, (2, E), 0, N, dtype=jnp.int32)

    # nn.Linear(hidden, 1, bias=False).weight has shape [1, hidden]
    bound = 1.0 / (H ** 0.5)
    w_i = jax.random.uniform(k_wi, (1, H), jnp.float32, -bound, bound)
    w_j = jax.random.uniform(k_wj, (1, H), jnp.float32, -bound, bound)
    w_r = jax.random.uniform(k_wr, (1, H), jnp.float32, -bound, bound)  # a_r: unused in forward

    # Small tiles so the test exercises both grid axes (4 row tiles x 4 column
    # tiles -> multi-step online softmax + pipelined adjacency stream).
    out = gat_forward(x, edge_index, w_i, w_j, tm=128, tk=128)
    out = jax.block_until_ready(out)

    ref = _ref_numpy(x, edge_index, w_i, w_j)
    np.testing.assert_allclose(np.asarray(out), ref, rtol=1e-3, atol=1e-3)

    print("KERNEL_OK")
</pallas_src>

<mosaic_0001>
module attributes {stable_mosaic.version = 11 : i64} {
  func.func @gat_kernel(%arg0: i32, %arg1: i32, %arg2: memref<128x128xf32, #tpu.memory_space<vmem>>, %arg3: memref<128x128xf32, #tpu.memory_space<vmem>>, %arg4: memref<128x2xf32, #tpu.memory_space<vmem>>, %arg5: memref<128x2xf32, #tpu.memory_space<vmem>>, %arg6: memref<128x128xbf16, #tpu.memory_space<vmem>>, %arg7: memref<128x128xf32, #tpu.memory_space<vmem>>, %arg8: memref<128x1xf32, #tpu.memory_space<vmem>>, %arg9: memref<128x1xf32, #tpu.memory_space<vmem>>, %arg10: memref<128x128xf32, #tpu.memory_space<vmem>>) attributes {dimension_semantics = [#tpu.dimension_semantics<parallel>, #tpu.dimension_semantics<arbitrary>], iteration_bounds = array<i64: 4, 4>, scalar_prefetch = 0 : i64, scratch_operands = 3 : i64, tpu.core_type = #tpu.core_type<tc>, window_params = [{transform_indices = @transform_0, window_bounds = array<i64: 128, 128>}, {transform_indices = @transform_1, window_bounds = array<i64: 128, 128>}, {pipeline_mode = #tpu.pipeline_mode<synchronous>, transform_indices = @transform_2, window_bounds = array<i64: 128, 2>}, {pipeline_mode = #tpu.pipeline_mode<synchronous>, transform_indices = @transform_3, window_bounds = array<i64: 128, 2>}, {transform_indices = @transform_4, window_bounds = array<i64: 128, 128>}, {transform_indices = @transform_5, window_bounds = array<i64: 128, 128>}]} {
    %c0_i32 = arith.constant 0 : i32
    %0 = arith.cmpi eq, %arg1, %c0_i32 : i32
    %1 = arith.extui %0 : i1 to i32
    %c0_i32_0 = arith.constant 0 : i32
    %2 = arith.cmpi ne, %1, %c0_i32_0 : i32
    scf.if %2 {
      %cst_31 = arith.constant -1.000000e+30 : f32
      %45 = vector.broadcast %cst_31 : f32 to vector<128x1xf32>
      %c0_32 = arith.constant 0 : index
      %c0_33 = arith.constant 0 : index
      %46 = vector.load %arg8[%c0_32, %c0_33] : memref<128x1xf32, #tpu.memory_space<vmem>>, vector<128x1xf32>
      tpu.vector_store %arg8[%c0_32, %c0_33], %45 {strides = array<i32>} : memref<128x1xf32, #tpu.memory_space<vmem>>, vector<128x1xf32>,
      %cst_34 = arith.constant 0.000000e+00 : f32
      %47 = vector.broadcast %cst_34 : f32 to vector<128x1xf32>
      %c0_35 = arith.constant 0 : index
      %c0_36 = arith.constant 0 : index
      %48 = vector.load %arg9[%c0_35, %c0_36] : memref<128x1xf32, #tpu.memory_space<vmem>>, vector<128x1xf32>
      tpu.vector_store %arg9[%c0_35, %c0_36], %47 {strides = array<i32>} : memref<128x1xf32, #tpu.memory_space<vmem>>, vector<128x1xf32>,
      %cst_37 = arith.constant 0.000000e+00 : f32
      %49 = vector.broadcast %cst_37 : f32 to vector<128x128xf32>
      %c0_38 = arith.constant 0 : index
      %c0_39 = arith.constant 0 : index
      %50 = vector.load %arg10[%c0_38, %c0_39] : memref<128x128xf32, #tpu.memory_space<vmem>>, vector<128x128xf32>
      tpu.vector_store %arg10[%c0_38, %c0_39], %49 {strides = array<i32>} : memref<128x128xf32, #tpu.memory_space<vmem>>, vector<128x128xf32>,
    } else {
    }
    %c0 = arith.constant 0 : index
    %c0_1 = arith.constant 0 : index
    %3 = vector.load %arg2[%c0, %c0_1] : memref<128x128xf32, #tpu.memory_space<vmem>>, vector<128x128xf32>
    %c0_2 = arith.constant 0 : index
    %c0_3 = arith.constant 0 : index
    %4 = vector.load %arg3[%c0_2, %c0_3] : memref<128x128xf32, #tpu.memory_space<vmem>>, vector<128x128xf32>
    %c0_4 = arith.constant 0 : index
    %c0_5 = arith.constant 0 : index
    %5 = vector.load %arg4[%c0_4, %c0_5] : memref<128x2xf32, #tpu.memory_space<vmem>>, vector<128x2xf32>
    %cst = arith.constant dense<0.000000e+00> : vector<128x2xf32>
    %6 = tpu.matmul %3, %5, %cst {dimension_numbers = #tpu.dot_dimension_numbers<[1], [0], [0], [1], [0, 0, 1, 1], [], []>} : vector<128x128xf32>, vector<128x2xf32>, vector<128x2xf32> -> vector<128x2xf32>
    %c0_6 = arith.constant 0 : index
    %c0_7 = arith.constant 0 : index
    %7 = vector.load %arg5[%c0_6, %c0_7] : memref<128x2xf32, #tpu.memory_space<vmem>>, vector<128x2xf32>
    %cst_8 = arith.constant dense<0.000000e+00> : vector<128x2xf32>
    %8 = tpu.matmul %4, %7, %cst_8 {dimension_numbers = #tpu.dot_dimension_numbers<[1], [0], [0], [1], [0, 0, 1, 1], [], []>} : vector<128x128xf32>, vector<128x2xf32>, vector<128x2xf32> -> vector<128x2xf32>
    %cst_9 = arith.constant dense<0.000000e+00> : vector<128x128xf32>
    %9 = tpu.matmul %6, %8, %cst_9 {dimension_numbers = #tpu.dot_dimension_numbers<[1], [1], [0], [0], [0, 0, 1, 0], [], []>} : vector<128x2xf32>, vector<128x2xf32>, vector<128x128xf32> -> vector<128x128xf32>
    %c0_10 = arith.constant 0 : index
    %c0_11 = arith.constant 0 : index
    %10 = vector.load %arg6[%c0_10, %c0_11] : memref<128x128xbf16, #tpu.memory_space<vmem>>, vector<128x128xbf16>
    %11 = arith.extf %10 : vector<128x128xbf16> to vector<128x128xf32>
    %cst_12 = arith.constant 0.000000e+00 : f32
    %12 = vector.broadcast %cst_12 : f32 to vector<128x128xf32>
    %13 = arith.cmpf ogt, %11, %12 : vector<128x128xf32>
    %cst_13 = arith.constant 0.00999999977 : f32
    %14 = vector.broadcast %cst_13 : f32 to vector<128x128xf32>
    %15 = arith.mulf %14, %9 : vector<128x128xf32>
    %16 = arith.maximumf %9, %15 : vector<128x128xf32>
    %cst_14 = arith.constant -1.000000e+30 : f32
    %17 = vector.broadcast %cst_14 : f32 to vector<128x128xf32>
    %18 = arith.select %13, %16, %17 : vector<128x128xi1>, vector<128x128xf32>
    %c0_15 = arith.constant 0 : index
    %c0_16 = arith.constant 0 : index
    %19 = vector.load %arg8[%c0_15, %c0_16] : memref<128x1xf32, #tpu.memory_space<vmem>>, vector<128x1xf32>
    %cst_17 = arith.constant dense<0xFF800000> : vector<128xf32>
    %20 = vector.multi_reduction <maximumf>, %18, %cst_17 [1] : vector<128x128xf32> to vector<128xf32>
    %21 = vector.shape_cast %20 : vector<128xf32> to vector<128x1xf32>
    %22 = arith.maximumf %19, %21 : vector<128x1xf32>
    %23 = arith.subf %19, %22 : vector<128x1xf32>
    %24 = math.exp %23 : vector<128x1xf32>
    %25 = vector.broadcast %22 : vector<128x1xf32> to vector<128x128xf32>
    %26 = arith.subf %18, %25 : vector<128x128xf32>
    %27 = math.exp %26 : vector<128x128xf32>
    %28 = arith.mulf %11, %27 : vector<128x128xf32>
    %c0_18 = arith.constant 0 : index
    %c0_19 = arith.constant 0 : index
    %29 = vector.load %arg9[%c0_18, %c0_19] : memref<128x1xf32, #tpu.memory_space<vmem>>, vector<128x1xf32>
    %30 = arith.mulf %24, %29 : vector<128x1xf32>
    %cst_20 = arith.constant dense<0.000000e+00> : vector<128xf32>
    %31 = vector.multi_reduction <add>, %28, %cst_20 [1] : vector<128x128xf32> to vector<128xf32>
    %32 = vector.shape_cast %31 : vector<128xf32> to vector<128x1xf32>
    %33 = arith.addf %30, %32 : vector<128x1xf32>
    %c0_21 = arith.constant 0 : index
    %c0_22 = arith.constant 0 : index
    %34 = vector.load %arg9[%c0_21, %c0_22] : memref<128x1xf32, #tpu.memory_space<vmem>>, vector<128x1xf32>
    tpu.vector_store %arg9[%c0_21, %c0_22], %33 {strides = array<i32>} : memref<128x1xf32, #tpu.memory_space<vmem>>, vector<128x1xf32>,
    %c0_23 = arith.constant 0 : index
    %c0_24 = arith.constant 0 : index
    %35 = vector.load %arg10[%c0_23, %c0_24] : memref<128x128xf32, #tpu.memory_space<vmem>>, vector<128x128xf32>
    %36 = vector.broadcast %24 : vector<128x1xf32> to vector<128x128xf32>
    %37 = arith.mulf %36, %35 : vector<128x128xf32>
    %cst_25 = arith.constant dense<0.000000e+00> : vector<128x128xf32>
    %38 = tpu.matmul %28, %4, %cst_25 {dimension_numbers = #tpu.dot_dimension_numbers<[1], [0], [0], [1], [0, 0, 1, 1], [], []>} : vector<128x128xf32>, vector<128x128xf32>, vector<128x128xf32> -> vector<128x128xf32>
    %39 = arith.addf %37, %38 : vector<128x128xf32>
    %c0_26 = arith.constant 0 : index
    %c0_27 = arith.constant 0 : index
    %40 = vector.load %arg10[%c0_26, %c0_27] : memref<128x128xf32, #tpu.memory_space<vmem>>, vector<128x128xf32>
    tpu.vector_store %arg10[%c0_26, %c0_27], %39 {strides = array<i32>} : memref<128x128xf32, #tpu.memory_space<vmem>>, vector<128x128xf32>,
    %c0_28 = arith.constant 0 : index
    %c0_29 = arith.constant 0 : index
    %41 = vector.load %arg8[%c0_28, %c0_29] : memref<128x1xf32, #tpu.memory_space<vmem>>, vector<128x1xf32>
    tpu.vector_store %arg8[%c0_28, %c0_29], %22 {strides = array<i32>} : memref<128x1xf32, #tpu.memory_space<vmem>>, vector<128x1xf32>,
    %c3_i32 = arith.constant 3 : i32
    %42 = arith.cmpi eq, %arg1, %c3_i32 : i32
    %43 = arith.extui %42 : i1 to i32
    %c0_i32_30 = arith.constant 0 : i32
    %44 = arith.cmpi ne, %43, %c0_i32_30 : i32
    scf.if %44 {
      %c0_31 = arith.constant 0 : index
      %c0_32 = arith.constant 0 : index
      %45 = vector.load %arg9[%c0_31, %c0_32] : memref<128x1xf32, #tpu.memory_space<vmem>>, vector<128x1xf32>
      %46 = tpu.reciprocal %45 {approx = true} : vector<128x1xf32> -> vector<128x1xf32>
      %47 = arith.mulf %45, %46 : vector<128x1xf32>
      %cst_33 = arith.constant 2.000000e+00 : f32
      %48 = vector.broadcast %cst_33 : f32 to vector<128x1xf32>
      %49 = arith.subf %48, %47 : vector<128x1xf32>
      %50 = arith.mulf %46, %49 : vector<128x1xf32>
      %c0_34 = arith.constant 0 : index
      %c0_35 = arith.constant 0 : index
      %51 = vector.load %arg10[%c0_34, %c0_35] : memref<128x128xf32, #tpu.memory_space<vmem>>, vector<128x128xf32>
      %52 = vector.broadcast %50 : vector<128x1xf32> to vector<128x128xf32>
      %53 = arith.mulf %51, %52 : vector<128x128xf32>
      %cst_36 = arith.constant 0.000000e+00 : f32
      %54 = vector.broadcast %cst_36 : f32 to vector<128x128xf32>
      %55 = arith.maximumf %53, %54 : vector<128x128xf32>
      %c0_37 = arith.constant 0 : index
      %c0_38 = arith.constant 0 : index
      %56 = vector.load %arg7[%c0_37, %c0_38] : memref<128x128xf32, #tpu.memory_space<vmem>>, vector<128x128xf32>
      tpu.vector_store %arg7[%c0_37, %c0_38], %55 {strides = array<i32>} : memref<128x128xf32, #tpu.memory_space<vmem>>, vector<128x128xf32>,
    } else {
    }
    return
  }
  func.func @transform_0(%arg0: i32, %arg1: i32) -> (i32, i32) {
    %c0_i32 = arith.constant 0 : i32
    %c0_i32_0 = arith.constant 0 : i32
    return %arg0, %c0_i32 : i32, i32
  }
  func.func @transform_1(%arg0: i32, %arg1: i32) -> (i32, i32) {
    %c0_i32 = arith.constant 0 : i32
    %c0_i32_0 = arith.constant 0 : i32
    return %arg1, %c0_i32 : i32, i32
  }
  func.func @transform_2(%arg0: i32, %arg1: i32) -> (i32, i32) {
    %c0_i32 = arith.constant 0 : i32
    %c0_i32_0 = arith.constant 0 : i32
    %c0_i32_1 = arith.constant 0 : i32
    return %c0_i32, %c0_i32_0 : i32, i32
  }
  func.func @transform_3(%arg0: i32, %arg1: i32) -> (i32, i32) {
    %c0_i32 = arith.constant 0 : i32
    %c0_i32_0 = arith.constant 0 : i32
    %c0_i32_1 = arith.constant 0 : i32
    return %c0_i32, %c0_i32_0 : i32, i32
  }
  func.func @transform_4(%arg0: i32, %arg1: i32) -> (i32, i32) {
    %c0_i32 = arith.constant 0 : i32
    return %arg0, %arg1 : i32, i32
  }
  func.func @transform_5(%arg0: i32, %arg1: i32) -> (i32, i32) {
    %c0_i32 = arith.constant 0 : i32
    %c0_i32_0 = arith.constant 0 : i32
    return %arg0, %c0_i32 : i32, i32
  }
}

</mosaic_0001>

<bundles_post_ra>
// kernel: gat_forward.1
= control target key start
LH: loop header
LB: loop body
LE: loop exit
PB: predicated region body
PF: predicated region fallthrough
CT: control target
= control target key end

     0   :  { %s2816_s18 = smov 0   ;;  %s2818_s19 = smov 0   ;;  %s3591_s0 = inlined_call_operand.vmem [shape: f32[512,128], index: 0, kind: input, shape index: {}, may-alias: {0,1}]   ;;  %s3592_s1 = inlined_call_operand.vmem [shape: f32[512,128], index: 1, kind: input, shape index: {}, may-alias: {0,1}]   ;;  %s3593_s2 = inlined_call_operand.vmem [shape: f32[128,2], index: 2, kind: input, shape index: {}]   ;;  %s3594_s3 = inlined_call_operand.vmem [shape: f32[128,2], index: 3, kind: input, shape index: {}]   ;;  %s3595_s4 = inlined_call_operand.vmem [shape: bf16[512,512], index: 4, kind: input, shape index: {}]   ;;  %s3596_s5 = inlined_call_operand.vmem [shape: f32[512,128], index: 5, kind: output, shape index: {}]  }
   0x1   :  { %s2820_s20 = smov 0   ;;  %s2822_s21 = smov 0  }
   0x2   :  { %s2824_s22 = smov 0   ;;  %s2826_s23 = smov 0  }
   0x3   :  { %s2828_s24 = smov 0  }
   0x4 LB: > { %s24_s25 = sadd.s32 1, %s2772_s22  ;;  %s27_s26 = sadd.s32 1, %s2776_s23  ;;  %s2780_s24 = sphi %s2828_s24, %s15_s24   ;;  %s2776_s23 = sphi %s2826_s23, %s3619_s23   ;;  %s2772_s22 = sphi %s2824_s22, %s3618_s22   ;;  %s2768_s21 = sphi %s2822_s21, %s3617_s21   ;;  %s2764_s20 = sphi %s2820_s20, %s3616_s20   ;;  %s2760_s19 = sphi %s2818_s19, %s3615_s19   ;;  %s2756_s18 = sphi %s2816_s18, %s3614_s18  }
   0x5   : > { %p25_p0 = scmp.ge.s32.totalorder %s24_s25, 4  ;;  %p137_p1 = scmp.ne.s32.totalorder %s2760_s19, %s2756_s18 }
   0x6   : > { %p138_p2 = scmp.eq.s32.totalorder %s2780_s24, 0  ;;  %s130_s30 = sadd.s32 1, %s2760_s19 }
   0x7   : > { %s3621_s25 = smov (%p25_p0, %s24_s25), 0  ;;  %s3623_s26 = smov (!%p25_p0, %s27_s26), %s2776_s23 }
   0x8   : > { %p139_p3 = por %p138_p2, %p137_p1  ;;  %p29_p4 = scmp.ge.s32.totalorder %s3623_s26, 4 }
   0x9   : > { %s126_s27 = ssub.s32 %s2772_s22, %s3621_s25  ;;  %p2125_p6 = scmp.ge.s32.totalorder %s2780_s24, 16 }
   0xa   : > { %s3625_s26 = smov (%p29_p4, %s3623_s26), 0 }
   0xb   : > { %s125_s28 = ssub.s32 %s2776_s23, %s3625_s26  ;;  %195 = sbr.rel (%p2125_p6) target bundleno = 33 (0x21), region = 24 }
   0xc   : > { %s127_s29 = sor.u32 %s126_s27, %s125_s28 }
   0xd   : > { %p128_p5 = scmp.eq.s32.totalorder %s127_s29, 0 }
   0xf   : > { %s2867_s6 = scalar_select %p128_p5, %s2760_s19, %s130_s30  }
  0x10   : > { %216 = sbr.rel (!%p139_p3) target bundleno = 33 (0x21), region = 36  ;;  %s218_s7 = sand.u32 (%p139_p3), 1, %s2760_s19  }
  0x11   : > { %s2174_s8 = sshll.u32 (%p139_p3), %s2776_s23, 6  ;;  %s2126_s9 = sshll.u32 (%p139_p3), %s218_s7, 6 }
  0x12   : > { %s223_s10 = sadd.s32 (%p139_p3), %s2772_s22, %s2174_s8  ;;  %s220_s15 = scalar_lea.vmem (%p139_p3), [#allocation5], %s2126_s9 }
  0x13   : > { %s2129_s11 = sshll.u32 (%p139_p3), %s223_s10, 2 }
  0x14   : > { %s2876_s14 = scalar_lea.vmem (%p139_p3), %s3595_s4, %s2129_s11 }
  0x15   : > { %v242_v0 = vld [vmem:[%s2876_s14] sm:$0xf]  ;;  %v244_v1 = vld [vmem:[%s2876_s14 + $0x10] sm:$0xf] }
  0x16   : > { %v246_v2 = vld [vmem:[%s2876_s14 + $0x20] sm:$0xf]  ;;  %243 = vst [vmem:[%s220_s15] sm:$0xf] %v242_v0  ;;  %245 = vst [vmem:[%s220_s15 + $0x4] sm:$0xf] %v244_v1 }
  0x17   : > { %247 = vst [vmem:[%s220_s15 + $0x8] sm:$0xf] %v246_v2  ;;  %v248_v3 = vld [vmem:[%s2876_s14 + $0x30] sm:$0xf]  ;;  %v250_v4 = vld [vmem:[%s2876_s14 + $0x40] sm:$0xf] }
  0x18   : > { %v252_v5 = vld [vmem:[%s2876_s14 + $0x50] sm:$0xf]  ;;  %249 = vst [vmem:[%s220_s15 + $0xc] sm:$0xf] %v248_v3  ;;  %251 = vst [vmem:[%s220_s15 + $0x10] sm:$0xf] %v250_v4 }
  0x19   : > { %253 = vst [vmem:[%s220_s15 + $0x14] sm:$0xf] %v252_v5  ;;  %v254_v6 = vld [vmem:[%s2876_s14 + $0x60] sm:$0xf]  ;;  %v256_v7 = vld [vmem:[%s2876_s14 + $0x70] sm:$0xf] }
  0x1a   : > { %v258_v8 = vld [vmem:[%s2876_s14 + $0x80] sm:$0xf]  ;;  %255 = vst [vmem:[%s220_s15 + $0x18] sm:$0xf] %v254_v6  ;;  %257 = vst [vmem:[%s220_s15 + $0x1c] sm:$0xf] %v256_v7 }
  0x1b   : > { %259 = vst [vmem:[%s220_s15 + $0x20] sm:$0xf] %v258_v8  ;;  %v260_v9 = vld [vmem:[%s2876_s14 + $0x90] sm:$0xf]  ;;  %v262_v10 = vld [vmem:[%s2876_s14 + $0xa0] sm:$0xf] }
  0x1c   : > { %v264_v11 = vld [vmem:[%s2876_s14 + $0xb0] sm:$0xf]  ;;  %261 = vst [vmem:[%s220_s15 + $0x24] sm:$0xf] %v260_v9  ;;  %263 = vst [vmem:[%s220_s15 + $0x28] sm:$0xf] %v262_v10 }
  0x1d   : > { %265 = vst [vmem:[%s220_s15 + $0x2c] sm:$0xf] %v264_v11  ;;  %v266_v12 = vld [vmem:[%s2876_s14 + $0xc0] sm:$0xf]  ;;  %v268_v13 = vld [vmem:[%s2876_s14 + $0xd0] sm:$0xf] }
  0x1e   : > { %v270_v14 = vld [vmem:[%s2876_s14 + $0xe0] sm:$0xf]  ;;  %267 = vst [vmem:[%s220_s15 + $0x30] sm:$0xf] %v266_v12  ;;  %269 = vst [vmem:[%s220_s15 + $0x34] sm:$0xf] %v268_v13 }
  0x1f   : > { %271 = vst [vmem:[%s220_s15 + $0x38] sm:$0xf] %v270_v14  ;;  %v272_v15 = vld [vmem:[%s2876_s14 + $0xf0] sm:$0xf] }
  0x20   : > { %273 = vst [vmem:[%s220_s15 + $0x3c] sm:$0xf] %v272_v15 }
  0x21 PF: > { %p2130_p7 = scmp.ge.s32.totalorder %s2780_s24, 1  ;;  %p328_p8 = scmp.lt.s32.totalorder %s2780_s24, 17 }
  0x23   : > { %p329_p9 = pnand %p2130_p7, %p328_p8 }
  0x24   : > { %s335_s16 = sand.u32 (!%p329_p9), 1, %s2756_s18   ;;  %s2132_s17 = sshll.u32 (!%p329_p9), %s2768_s21, 4 }
  0x25   : > { %332 = sbr.rel (%p329_p9) target bundleno = 1299 (0x513), region = 77  ;;  %s2131_s27 = sshll.u32 (!%p329_p9), %s335_s16, 6 }
  0x26   : > { %p373_p10 = scmp.lt.s32.totalorder (!%p329_p9), %s2132_s17, 63  ;;  %s2134_s28 = sshll.u32 (!%p329_p9), %s2764_s20, 4 }
  0x27   : > { %p379_p11 = scmp.lt.s32.totalorder (!%p329_p9), %s2134_s28, 63  ;;  %s2914_s14 = scalar_lea.vmem (!%p329_p9), [#allocation5], %s2131_s27 }
  0x28   : > { %p2138_p12 = scmp.ne.s32.totalorder (!%p329_p9), %s2764_s20, 0 }
  0x2a   : > { %s3627_s17 = smov (!%p373_p10, %s2132_s17), 63  ;;  %s3629_s28 = smov (!%p379_p11, %s2134_s28), 63 }
  0x2b   : > { %s2133_s29 = sshll.u32 %s3627_s17, 3  ;;  %s2135_s12 = sshll.u32 %s3629_s28, 3 }
  0x2c   : > { %s2902_s8 = scalar_lea.vmem %s3591_s0, %s2133_s29  ;;  %s2907_s11 = scalar_lea.vmem %s3596_s5, %s2133_s29 }
  0x2d   : > { %s2912_s13 = scalar_lea.vmem %s3592_s1, %s2135_s12  ;;  %394 = sbr.rel (%p2138_p12) target bundleno = 75 (0x4b), region = 85 }
  0x32   : > { %vm395_vm0 = vcmask 7168   ;;  %v2782_v16 = vmov -1e+30   ;;  %v2783_v17 = vmov 0.0  }
  0x33   : > { %396 = vst.msk [vmem:[#allocation2] sm:$0xff] %vm395_vm0, %v2782_v16  ;;  %397 = vst.msk [vmem:[#allocation2 + $0x8] sm:$0xff] %vm395_vm0, %v2782_v16 }
  0x34   : > { %398 = vst.msk [vmem:[#allocation2 + $0x10] sm:$0xff] %vm395_vm0, %v2782_v16  ;;  %399 = vst.msk [vmem:[#allocation2 + $0x18] sm:$0xff] %vm395_vm0, %v2782_v16 }
  0x35   : > { %400 = vst.msk [vmem:[#allocation2 + $0x20] sm:$0xff] %vm395_vm0, %v2782_v16  ;;  %401 = vst.msk [vmem:[#allocation2 + $0x28] sm:$0xff] %vm395_vm0, %v2782_v16 }
  0x36   : > { %402 = vst.msk [vmem:[#allocation2 + $0x30] sm:$0xff] %vm395_vm0, %v2782_v16  ;;  %403 = vst.msk [vmem:[#allocation2 + $0x38] sm:$0xff] %vm395_vm0, %v2782_v16 }
  0x37   : > { %404 = vst.msk [vmem:[#allocation2 + $0x40] sm:$0xff] %vm395_vm0, %v2782_v16  ;;  %405 = vst.msk [vmem:[#allocation2 + $0x48] sm:$0xff] %vm395_vm0, %v2782_v16 }
  0x38   : > { %406 = vst.msk [vmem:[#allocation2 + $0x50] sm:$0xff] %vm395_vm0, %v2782_v16  ;;  %407 = vst.msk [vmem:[#allocation2 + $0x58] sm:$0xff] %vm395_vm0, %v2782_v16 }
  0x39   : > { %408 = vst.msk [vmem:[#allocation2 + $0x60] sm:$0xff] %vm395_vm0, %v2782_v16  ;;  %409 = vst.msk [vmem:[#allocation2 + $0x68] sm:$0xff] %vm395_vm0, %v2782_v16 }
  0x3a   : > { %410 = vst.msk [vmem:[#allocation2 + $0x70] sm:$0xff] %vm395_vm0, %v2782_v16  ;;  %411 = vst.msk [vmem:[#allocation2 + $0x78] sm:$0xff] %vm395_vm0, %v2782_v16 }
  0x3b   : > { %412 = vst.msk [vmem:[#allocation3] sm:$0xff] %vm395_vm0, %v2783_v17  ;;  %413 = vst.msk [vmem:[#allocation3 + $0x8] sm:$0xff] %vm395_vm0, %v2783_v17 }
  0x3c   : > { %414 = vst.msk [vmem:[#allocation3 + $0x10] sm:$0xff] %vm395_vm0, %v2783_v17  ;;  %415 = vst.msk [vmem:[#allocation3 + $0x18] sm:$0xff] %vm395_vm0, %v2783_v17 }
  0x3d   : > { %416 = vst.msk [vmem:[#allocation3 + $0x20] sm:$0xff] %vm395_vm0, %v2783_v17  ;;  %417 = vst.msk [vmem:[#allocation3 + $0x28] sm:$0xff] %vm395_vm0, %v2783_v17 }
  0x3e   : > { %418 = vst.msk [vmem:[#allocation3 + $0x30] sm:$0xff] %vm395_vm0, %v2783_v17  ;;  %419 = vst.msk [vmem:[#allocation3 + $0x38] sm:$0xff] %vm395_vm0, %v2783_v17 }
  0x3f   : > { %420 = vst.msk [vmem:[#allocation3 + $0x40] sm:$0xff] %vm395_vm0, %v2783_v17  ;;  %421 = vst.msk [vmem:[#allocation3 + $0x48] sm:$0xff] %vm395_vm0, %v2783_v17 }
  0x40   : > { %422 = vst.msk [vmem:[#allocation3 + $0x50] sm:$0xff] %vm395_vm0, %v2783_v17  ;;  %423 = vst.msk [vmem:[#allocation3 + $0x58] sm:$0xff] %vm395_vm0, %v2783_v17 }
  0x41   : > { %424 = vst.msk [vmem:[#allocation3 + $0x60] sm:$0xff] %vm395_vm0, %v2783_v17  ;;  %425 = vst.msk [vmem:[#allocation3 + $0x68] sm:$0xff] %vm395_vm0, %v2783_v17 }
  0x42   : > { %426 = vst.msk [vmem:[#allocation3 + $0x70] sm:$0xff] %vm395_vm0, %v2783_v17  ;;  %427 = vst.msk [vmem:[#allocation3 + $0x78] sm:$0xff] %vm395_vm0, %v2783_v17 }
  0x43   : > { %428 = vst [vmem:[#allocation4 + $0x30] sm:$0xff] %v2783_v17  ;;  %429 = vst [vmem:[#allocation4] sm:$0xff] %v2783_v17 }
  0x44   : > { %430 = vst [vmem:[#allocation4 + $0x58] sm:$0xff] %v2783_v17  ;;  %431 = vst [vmem:[#allocation4 + $0x18] sm:$0xff] %v2783_v17 }
  0x45   : > { %432 = vst [vmem:[#allocation4 + $0x50] sm:$0xff] %v2783_v17  ;;  %433 = vst [vmem:[#allocation4 + $0x68] sm:$0xff] %v2783_v17 }
  0x46   : > { %434 = vst [vmem:[#allocation4 + $0x8] sm:$0xff] %v2783_v17  ;;  %435 = vst [vmem:[#allocation4 + $0x48] sm:$0xff] %v2783_v17 }
  0x47   : > { %436 = vst [vmem:[#allocation4 + $0x40] sm:$0xff] %v2783_v17  ;;  %437 = vst [vmem:[#allocation4 + $0x20] sm:$0xff] %v2783_v17 }
  0x48   : > { %438 = vst [vmem:[#allocation4 + $0x10] sm:$0xff] %v2783_v17  ;;  %439 = vst [vmem:[#allocation4 + $0x38] sm:$0xff] %v2783_v17 }
  0x49   : > { %440 = vst [vmem:[#allocation4 + $0x60] sm:$0xff] %v2783_v17  ;;  %441 = vst [vmem:[#allocation4 + $0x70] sm:$0xff] %v2783_v17 }
  0x4a   : > { %442 = vst [vmem:[#allocation4 + $0x78] sm:$0xff] %v2783_v17  ;;  %443 = vst [vmem:[#allocation4 + $0x28] sm:$0xff] %v2783_v17 }
  0x4b PF: > { %v652_v18 = vld [vmem:[%s3594_s3 + $0x78] sm:$0xff]  ;;  %v651_v19 = vld [vmem:[%s3594_s3 + $0x70] sm:$0xff]  ;;  %v650_v20 = vld [vmem:[%s3594_s3 + $0x68] sm:$0xff]  ;;  %vm798_vm1 = vcmask 15360   ;;  %p2171_p13 = scmp.ne.s32.totalorder %s2764_s20, 3 }
  0x4c   : > { %2398 = vmatprep.subr.mxu1 %v652_v18  ;;  %v649_v21 = vld [vmem:[%s3594_s3 + $0x60] sm:$0xff]  ;;  %v648_v23 = vld [vmem:[%s3594_s3 + $0x58] sm:$0xff]  ;;  %v647_v24 = vld [vmem:[%s3594_s3 + $0x50] sm:$0xff] }
  0x4d   : > { %2399 = vmatpush3.msra.mxu1 %v652_v18  ;;  %v2962_v22 = vld [vmem:[%s2912_s13] sm:$0xff]  ;;  %v646_v25 = vld [vmem:[%s3594_s3 + $0x48] sm:$0xff]  ;;  %v491_v26 = vld [vmem:[%s3593_s2 + $0x78] sm:$0xff] }
  0x4e   : > { %2400 = vmatprep.subr.mxu1 %v651_v19  ;;  %2430 = vmatprep.mubr.f32.mxu1 %v2962_v22  ;;  %v490_v27 = vld [vmem:[%s3593_s2 + $0x70] sm:$0xff]  ;;  %v645_v28 = vld [vmem:[%s3594_s3 + $0x40] sm:$0xff]  ;;  %v489_v29 = vld [vmem:[%s3593_s2 + $0x68] sm:$0xff] }
  0x4f   : > { %2401 = vmatpush3.msra.mxu1 %v651_v19  ;;  %2342 = vmatprep.subr.mxu0 %v491_v26  ;;  %v644_v30 = vld [vmem:[%s3594_s3 + $0x38] sm:$0xff]  ;;  %v488_v31 = vld [vmem:[%s3593_s2 + $0x60] sm:$0xff]  ;;  %v643_v32 = vld [vmem:[%s3594_s3 + $0x30] sm:$0xff] }
  0x50   : > { %2402 = vmatprep.subr.mxu1 %v650_v20  ;;  %2343 = vmatpush3.msra.mxu0 %v491_v26  ;;  %v487_v33 = vld [vmem:[%s3593_s2 + $0x58] sm:$0xff]  ;;  %v642_v34 = vld [vmem:[%s3594_s3 + $0x28] sm:$0xff]  ;;  %v486_v35 = vld [vmem:[%s3593_s2 + $0x50] sm:$0xff] }
  0x51   : > { %2403 = vmatpush3.msra.mxu1 %v650_v20  ;;  %2344 = vmatprep.subr.mxu0 %v490_v27  ;;  %v641_v36 = vld [vmem:[%s3594_s3 + $0x20] sm:$0xff]  ;;  %v485_v37 = vld [vmem:[%s3593_s2 + $0x48] sm:$0xff]  ;;  %v640_v38 = vld [vmem:[%s3594_s3 + $0x18] sm:$0xff] }
  0x52   : > { %2404 = vmatprep.subr.mxu1 %v649_v21  ;;  %2345 = vmatpush3.msra.mxu0 %v490_v27  ;;  %v484_v39 = vld [vmem:[%s3593_s2 + $0x40] sm:$0xff]  ;;  %v639_v40 = vld [vmem:[%s3594_s3 + $0x10] sm:$0xff]  ;;  %v483_v41 = vld [vmem:[%s3593_s2 + $0x38] sm:$0xff] }
  0x53   : > { %2405 = vmatpush3.msra.mxu1 %v649_v21  ;;  %2346 = vmatprep.subr.mxu0 %v489_v29  ;;  %v638_v42 = vld [vmem:[%s3594_s3 + $0x8] sm:$0xff]  ;;  %v482_v43 = vld [vmem:[%s3593_s2 + $0x30] sm:$0xff]  ;;  %v637_v44 = vld [vmem:[%s3594_s3] sm:$0xff] }
  0x54   : > { %2406 = vmatprep.subr.mxu1 %v648_v23  ;;  %2347 = vmatpush3.msra.mxu0 %v489_v29  ;;  %v481_v45 = vld [vmem:[%s3593_s2 + $0x28] sm:$0xff]  ;;  %v480_v47 = vld [vmem:[%s3593_s2 + $0x20] sm:$0xff]  ;;  %v3041_v48 = vld [vmem:[%s2912_s13 + $0x10] sm:$0xff] }
  0x55   : > { %2407 = vmatpush3.msra.mxu1 %v648_v23  ;;  %2348 = vmatprep.subr.mxu0 %v488_v31  ;;  %v3035_v46 = vld [vmem:[%s2912_s13 + $0x8] sm:$0xff]  ;;  %v479_v49 = vld [vmem:[%s3593_s2 + $0x18] sm:$0xff]  ;;  %v444_v50 = vld [vmem:[%s2902_s8] sm:$0xff] }
  0x56   : > { %2408 = vmatprep.subr.mxu1 %v647_v24  ;;  %2349 = vmatpush3.msra.mxu0 %v488_v31  ;;  %v3050_v51 = vld [vmem:[%s2912_s13 + $0x18] sm:$0xff]  ;;  %v478_v52 = vld [vmem:[%s3593_s2 + $0x10] sm:$0xff]  ;;  %v3056_v53 = vld [vmem:[%s2912_s13 + $0x20] sm:$0xff] }
  0x57   : > { %2409 = vmatpush3.msra.mxu1 %v647_v24  ;;  %2350 = vmatprep.subr.mxu0 %v487_v33  ;;  %v3059_v54 = vld [vmem:[%s2912_s13 + $0x78] sm:$0xff]  ;;  %v477_v55 = vld [vmem:[%s3593_s2 + $0x8] sm:$0xff]  ;;  %v476_v57 = vld [vmem:[%s3593_s2] sm:$0xff] }
  0x58   : > { %2410 = vmatprep.subr.mxu1 %v646_v25  ;;  %2351 = vmatpush3.msra.mxu0 %v487_v33  ;;  %v3068_v56 = vld [vmem:[%s2912_s13 + $0x28] sm:$0xff]  ;;  %v466_v58 = vld [vmem:[%s2912_s13 + $0x30] sm:$0xff]  ;;  %v467_v62 = vld [vmem:[%s2912_s13 + $0x38] sm:$0xff] }
  0x59   : > { %2411 = vmatpush3.msra.mxu1 %v646_v25  ;;  %2352 = vmatprep.subr.mxu0 %v486_v35  ;;  %v474_v59 = vld [vmem:[%s2912_s13 + $0x70] sm:$0xff]  ;;  %v445_v60 = vld [vmem:[%s2902_s8 + $0x8] sm:$0xff]  ;;  %v468_v63 = vld [vmem:[%s2912_s13 + $0x40] sm:$0xff] }
  0x5a   : > { %2412 = vmatprep.subr.mxu1 %v645_v28  ;;  %2353 = vmatpush3.msra.mxu0 %v486_v35  ;;  %v446_v61 = vld [vmem:[%s2902_s8 + $0x10] sm:$0xff]  ;;  %v473_v0 = vld [vmem:[%s2912_s13 + $0x68] sm:$0xff]  ;;  %v447_v1 = vld [vmem:[%s2902_s8 + $0x18] sm:$0xff] }
  0x5b   : > { %2413 = vmatpush3.msra.mxu1 %v645_v28  ;;  %2354 = vmatprep.subr.mxu0 %v485_v37  ;;  %v448_v2 = vld [vmem:[%s2902_s8 + $0x20] sm:$0xff]  ;;  %v469_v3 = vld [vmem:[%s2912_s13 + $0x48] sm:$0xff]  ;;  %v470_v5 = vld [vmem:[%s2912_s13 + $0x50] sm:$0xff] }
  0x5c   : > { %2414 = vmatprep.subr.mxu1 %v644_v30  ;;  %2355 = vmatpush3.msra.mxu0 %v485_v37  ;;  %v472_v4 = vld [vmem:[%s2912_s13 + $0x60] sm:$0xff]  ;;  %v471_v6 = vld [vmem:[%s2912_s13 + $0x58] sm:$0xff]  ;;  %v449_v7 = vld [vmem:[%s2902_s8 + $0x28] sm:$0xff] }
  0x5d   : > { %2415 = vmatpush3.msra.mxu1 %v644_v30  ;;  %2356 = vmatprep.subr.mxu0 %v484_v39  ;;  %v450_v8 = vld [vmem:[%s2902_s8 + $0x30] sm:$0xff]  ;;  %v451_v9 = vld [vmem:[%s2902_s8 + $0x38] sm:$0xff]  ;;  %v452_v10 = vld [vmem:[%s2902_s8 + $0x40] sm:$0xff] }
  0x5e   : > { %2416 = vmatprep.subr.mxu1 %v643_v32  ;;  %2357 = vmatpush3.msra.mxu0 %v484_v39  ;;  %v453_v11 = vld [vmem:[%s2902_s8 + $0x48] sm:$0xff]  ;;  %v454_v12 = vld [vmem:[%s2902_s8 + $0x50] sm:$0xff]  ;;  %v455_v13 = vld [vmem:[%s2902_s8 + $0x58] sm:$0xff] }
  0x5f   : > { %2417 = vmatpush3.msra.mxu1 %v643_v32  ;;  %2358 = vmatprep.subr.mxu0 %v483_v41  ;;  %v456_v14 = vld [vmem:[%s2902_s8 + $0x60] sm:$0xff]  ;;  %v457_v15 = vld [vmem:[%s2902_s8 + $0x68] sm:$0xff]  ;;  %v458_v16 = vld [vmem:[%s2902_s8 + $0x70] sm:$0xff] }
  0x60   : > { %2418 = vmatprep.subr.mxu1 %v642_v34  ;;  %2359 = vmatpush3.msra.mxu0 %v483_v41  ;;  %v459_v17 = vld [vmem:[%s2902_s8 + $0x78] sm:$0xff] }
  0x61   : > { %2419 = vmatpush3.msra.mxu1 %v642_v34  ;;  %2360 = vmatprep.subr.mxu0 %v482_v43 }
  0x62   : > { %2420 = vmatprep.subr.mxu1 %v641_v36  ;;  %2361 = vmatpush3.msra.mxu0 %v482_v43 }
  0x63   : > { %2421 = vmatpush3.msra.mxu1 %v641_v36  ;;  %2362 = vmatprep.subr.mxu0 %v481_v45 }
  0x64   : > { %2422 = vmatprep.subr.mxu1 %v640_v38  ;;  %2363 = vmatpush3.msra.mxu0 %v481_v45 }
  0x65   : > { %2423 = vmatpush3.msra.mxu1 %v640_v38  ;;  %2364 = vmatprep.subr.mxu0 %v480_v47 }
  0x66   : > { %2424 = vmatprep.subr.mxu1 %v639_v40  ;;  %2365 = vmatpush3.msra.mxu0 %v480_v47 }
  0x67   : > { %2425 = vmatpush3.msra.mxu1 %v639_v40  ;;  %2366 = vmatprep.subr.mxu0 %v479_v49 }
  0x68   : > { %2426 = vmatprep.subr.mxu1 %v638_v42  ;;  %2374 = vmatprep.mubr.f32.mxu0 %v444_v50  ;;  %v3161_v50 = vld [vmem:[%s2914_s14] sm:$0xff]  }
  0x69   : > { %2427 = vmatpush3.msra.mxu1 %v638_v42  ;;  %2367 = vmatpush3.msra.mxu0 %v479_v49 }
  0x6a   : > { %2428 = vmatprep.subr.mxu1 %v637_v44  ;;  %2368 = vmatprep.subr.mxu0 %v478_v52 }
  0x6b   : > { %2429 = vmatpush3.msra.mxu1 %v637_v44  ;;  %2369 = vmatpush3.msra.mxu0 %v478_v52 }
  0x6c   : > { %2431 = vmatmul.mubr.f32.vlgmr.msra.gmra.mxu1 %v3035_v46  ;;  %2510 = vmatprep.subr.mxu1 %v3059_v54 }
  0x6d   : > { %2433 = vmatprep.mubr.f32.mxu1 %v3041_v48  ;;  %2370 = vmatprep.subr.mxu0 %v477_v55 }
  0x6e   : > { %2511 = vmatpush3.msra.mxu1 %v3059_v54  ;;  %2371 = vmatpush3.msra.mxu0 %v477_v55 }
  0x6f   : > { %2512 = vmatprep.subr.mxu1 %v474_v59  ;;  %2372 = vmatprep.subr.mxu0 %v476_v57 }
  0x70   : > { %2434 = vmatmul.mubr.f32.gmra.mxu1 %v3050_v51  ;;  %2373 = vmatpush3.msra.mxu0 %v476_v57 }
  0x71   : > { %2436 = vmatprep.mubr.f32.mxu1 %v3056_v53  ;;  %2375 = vmatmul.mubr.f32.vlgmr.msra.gmra.mxu0 %v445_v60 }
  0x72   : > { %2513 = vmatpush3.msra.mxu1 %v474_v59  ;;  %2377 = vmatprep.mubr.f32.mxu0 %v446_v61 }
  0x73   : > { %2514 = vmatprep.subr.mxu1 %v473_v0 }
  0x74   : > { %2437 = vmatmul.mubr.f32.gmra.mxu1 %v3068_v56 }
  0x75   : > { %2439 = vmatprep.mubr.f32.mxu1 %v466_v58  ;;  %2515 = vmatpush3.msra.mxu1 %v473_v0 }
  0x76   : > { %2378 = vmatmul.mubr.f32.gmra.mxu0 %v447_v1  ;;  %2516 = vmatprep.subr.mxu1 %v472_v4 }
  0x77   : > { %2380 = vmatprep.mubr.f32.mxu0 %v448_v2  ;;  %2517 = vmatpush3.msra.mxu1 %v472_v4 }
  0x78   : > { %2440 = vmatmul.mubr.f32.gmra.mxu1 %v467_v62  ;;  %2518 = vmatprep.subr.mxu1 %v471_v6 }
  0x79   : > { %2442 = vmatprep.mubr.f32.mxu1 %v468_v63  ;;  %2519 = vmatpush3.msra.mxu1 %v471_v6 }
  0x7a   : > { %2381 = vmatmul.mubr.f32.gmra.mxu0 %v449_v7  ;;  %2520 = vmatprep.subr.mxu1 %v470_v5 }
  0x7b   : > { %2383 = vmatprep.mubr.f32.mxu0 %v450_v8  ;;  %2521 = vmatpush3.msra.mxu1 %v470_v5 }
  0x7c   : > { %2443 = vmatmul.mubr.f32.gmra.mxu1 %v469_v3  ;;  %2522 = vmatprep.subr.mxu1 %v469_v3 }
  0x7d   : > { %2445 = vmatprep.mubr.f32.mxu1 %v470_v5  ;;  %2523 = vmatpush3.msra.mxu1 %v469_v3 }
  0x7e   : > { %2384 = vmatmul.mubr.f32.gmra.mxu0 %v451_v9  ;;  %2524 = vmatprep.subr.mxu1 %v468_v63 }
  0x7f   : > { %2386 = vmatprep.mubr.f32.mxu0 %v452_v10  ;;  %2525 = vmatpush3.msra.mxu1 %v468_v63 }
  0x80   : > { %2446 = vmatmul.mubr.f32.gmra.mxu1 %v471_v6  ;;  %2526 = vmatprep.subr.mxu1 %v467_v62 }
  0x81   : > { %2448 = vmatprep.mubr.f32.mxu1 %v472_v4  ;;  %2527 = vmatpush3.msra.mxu1 %v467_v62  ;;  %v3172_v62 = vld [vmem:[%s2914_s14 + $0x10] sm:$0xff]  }
  0x82   : > { %2387 = vmatmul.mubr.f32.gmra.mxu0 %v453_v11  ;;  %2528 = vmatprep.subr.mxu1 %v466_v58  ;;  %v2186_v6 = vunpack.c.h.bf16 %v3172_v62  ;;  %v2185_v7 = vunpack.c.l.bf16 %v3172_v62  ;;  %v3187_v11 = vld [vmem:[%s2914_s14 + $0x18] sm:$0xff]  }
  0x83   : > { %2389 = vmatprep.mubr.f32.mxu0 %v454_v12  ;;  %2529 = vmatpush3.msra.mxu1 %v466_v58 }
  0x84   : > { %2449 = vmatmul.mubr.f32.gmra.mxu1 %v473_v0  ;;  %2530 = vmatprep.subr.mxu1 %v3068_v56  ;;  %vm1077_vm6 = vcmp.gt.f32.partialorder %v2186_v6, 0.0  ;;  %vm1076_vm7 = vcmp.gt.f32.partialorder %v2185_v7, 0.0 }
  0x85   : > { %2451 = vmatprep.mubr.f32.mxu1 %v474_v59  ;;  %2531 = vmatpush3.msra.mxu1 %v3068_v56  ;;  %v2178_v59 = vunpack.c.h.bf16 %v3161_v50 }
  0x86   : > { %2390 = vmatmul.mubr.f32.gmra.mxu0 %v455_v13  ;;  %2532 = vmatprep.subr.mxu1 %v3056_v53 }
  0x87   : > { %2392 = vmatprep.mubr.f32.mxu0 %v456_v14  ;;  %2533 = vmatpush3.msra.mxu1 %v3056_v53  ;;  %v2177_v53 = vunpack.c.l.bf16 %v3161_v50  ;;  %vm1073_vm4 = vcmp.gt.f32.partialorder %v2178_v59, 0.0 }
  0x88   : > { %2452 = vmatmul.mubr.f32.gmra.mxu1 %v3059_v54  ;;  %2534 = vmatprep.subr.mxu1 %v3050_v51 }
  0x89   : > { %2535 = vmatpush3.msra.mxu1 %v3050_v51  ;;  %v3164_v51 = vld [vmem:[%s2914_s14 + $0x8] sm:$0xff]   ;;  %vm1072_vm2 = vcmp.gt.f32.partialorder %v2177_v53, 0.0 }
  0x8a   : > { %2393 = vmatmul.mubr.f32.gmra.mxu0 %v457_v15  ;;  %2536 = vmatprep.subr.mxu1 %v3041_v48  ;;  %v2182_v55 = vunpack.c.h.bf16 %v3164_v51  ;;  %v2181_v0 = vunpack.c.l.bf16 %v3164_v51 }
  0x8b   : > { %2395 = vmatprep.mubr.f32.mxu0 %v458_v16  ;;  %2537 = vmatpush3.msra.mxu1 %v3041_v48 }
  0x8c   : > { %2538 = vmatprep.subr.mxu1 %v3035_v46  ;;  %vm1075_vm3 = vcmp.gt.f32.partialorder %v2182_v55, 0.0  ;;  %vm1074_vm5 = vcmp.gt.f32.partialorder %v2181_v0, 0.0 }
  0x8d   : > { %2539 = vmatpush3.msra.mxu1 %v3035_v46 }
  0x8e   : > { %2396 = vmatmul.mubr.f32.gmra.mxu0 %v459_v17  ;;  %2540 = vmatprep.subr.mxu1 %v2962_v22  ;;  %v2190_v17 = vunpack.c.h.bf16 %v3187_v11 }
  0x8f   : > { %2541 = vmatpush3.msra.mxu1 %v2962_v22 }
  0x90   : > { %vm1079_vm8 = vcmp.gt.f32.partialorder %v2190_v17, 0.0 }
 0x12c   : > { %v2432_v18 = vpop.f32.mrf.mxu1 }
 0x12e   : > { %v719_v19 = vpop.f32.mrf.mxu1 }
 0x130   : > { %v2435_v20 = vpop.f32.mrf.mxu1 }
 0x131   : > { %v2376_v25 = vpop.f32.mrf.mxu0 }
 0x132   : > { %v729_v21 = vpop.f32.mrf.mxu1 }
 0x133   : > { %v558_v27 = vpop.f32.mrf.mxu0 }
 0x134   : > { %v2438_v23 = vpop.f32.mrf.mxu1  ;;  %2486 = vmatprep.mubr.msk.f32.mxu0 %vm798_vm1, %v558_v27 }
 0x136   : > { %v739_v24 = vpop.f32.mrf.mxu1  ;;  %v2379_v36 = vpop.f32.mrf.mxu0 }
 0x138   : > { %v2441_v26 = vpop.f32.mrf.mxu1  ;;  %v568_v37 = vpop.f32.mrf.mxu0 }
 0x13a   : > { %v749_v28 = vpop.f32.mrf.mxu1  ;;  %v2382_v38 = vpop.f32.mrf.mxu0 }
 0x13c   : > { %v2444_v29 = vpop.f32.mrf.mxu1  ;;  %v578_v39 = vpop.f32.mrf.mxu0 }
 0x13e   : > { %v759_v30 = vpop.f32.mrf.mxu1  ;;  %v2385_v40 = vpop.f32.mrf.mxu0 }
 0x140   : > { %v2447_v31 = vpop.f32.mrf.mxu1  ;;  %v588_v41 = vpop.f32.mrf.mxu0 }
 0x142   : > { %v769_v32 = vpop.f32.mrf.mxu1  ;;  %v2388_v42 = vpop.f32.mrf.mxu0 }
 0x144   : > { %v2450_v33 = vpop.f32.mrf.mxu1  ;;  %v598_v43 = vpop.f32.mrf.mxu0 }
 0x146   : > { %v779_v34 = vpop.f32.mrf.mxu1  ;;  %v2391_v44 = vpop.f32.mrf.mxu0 }
 0x148   : > { %v2453_v22 = vpop.f32.mrf.mxu1  ;;  %v608_v45 = vpop.f32.mrf.mxu0 }
 0x149   : > { %2454 = vmatprep.subr.msk.mxu0 %vm798_vm1, %v2453_v22 }
 0x14a   : > { %v789_v35 = vpop.f32.mrf.mxu1  ;;  %2455 = vmatpush3.xpose.msk.msra.mxu0 %vm798_vm1, %v2453_v22  ;;  %v2394_v46 = vpop.f32.mrf.mxu0 }
 0x14b   : > { %2456 = vmatprep.subr.msk.mxu0 %vm798_vm1, %v789_v35 }
 0x14c   : > { %v618_v47 = vpop.f32.mrf.mxu0 }
 0x14e   : > { %2457 = vmatpush3.xpose.msk.msra.mxu0 %vm798_vm1, %v789_v35  ;;  %v2397_v48 = vpop.f32.mrf.mxu0 }
 0x14f   : > { %2458 = vmatprep.subr.msk.mxu0 %vm798_vm1, %v2450_v33 }
 0x150   : > { %v628_v49 = vpop.f32.mrf.mxu0 }
 0x152   : > { %2459 = vmatpush3.xpose.msk.msra.mxu0 %vm798_vm1, %v2450_v33 }
 0x153   : > { %2460 = vmatprep.subr.msk.mxu0 %vm798_vm1, %v779_v34 }
 0x156   : > { %2461 = vmatpush3.xpose.msk.msra.mxu0 %vm798_vm1, %v779_v34  ;;  %v3219_v34 = vld [vmem:[%s2914_s14 + $0x28] sm:$0xff]  }
 0x157   : > { %2462 = vmatprep.subr.msk.mxu0 %vm798_vm1, %v2447_v31 }
 0x15a   : > { %2463 = vmatpush3.xpose.msk.msra.mxu0 %vm798_vm1, %v2447_v31 }
 0x15b   : > { %2464 = vmatprep.subr.msk.mxu0 %vm798_vm1, %v769_v32 }
 0x15e   : > { %2465 = vmatpush3.xpose.msk.msra.mxu0 %vm798_vm1, %v769_v32 }
 0x15f   : > { %2466 = vmatprep.subr.msk.mxu0 %vm798_vm1, %v2444_v29 }
 0x162   : > { %2467 = vmatpush3.xpose.msk.msra.mxu0 %vm798_vm1, %v2444_v29 }
 0x163   : > { %2468 = vmatprep.subr.msk.mxu0 %vm798_vm1, %v759_v30 }
 0x166   : > { %2469 = vmatpush3.xpose.msk.msra.mxu0 %vm798_vm1, %v759_v30 }
 0x167   : > { %2470 = vmatprep.subr.msk.mxu0 %vm798_vm1, %v2441_v26 }
 0x16a   : > { %2471 = vmatpush3.xpose.msk.msra.mxu0 %vm798_vm1, %v2441_v26 }
 0x16b   : > { %2472 = vmatprep.subr.msk.mxu0 %vm798_vm1, %v749_v28 }
 0x16e   : > { %2473 = vmatpush3.xpose.msk.msra.mxu0 %vm798_vm1, %v749_v28 }
 0x16f   : > { %2474 = vmatprep.subr.msk.mxu0 %vm798_vm1, %v2438_v23 }
 0x172   : > { %2475 = vmatpush3.xpose.msk.msra.mxu0 %vm798_vm1, %v2438_v23  ;;  %v3204_v23 = vld [vmem:[%s2914_s14 + $0x20] sm:$0xff]  }
 0x173   : > { %2476 = vmatprep.subr.msk.mxu0 %vm798_vm1, %v739_v24  ;;  %v3604_v30 = vunpack.c.h.bf16 %v3204_v23  ;;  %v3603_v31 = vunpack.c.l.bf16 %v3204_v23 }
 0x175   : > { %vm1081_vm10 = vcmp.gt.f32.partialorder %v3604_v30, 0.0  ;;  %vm1080_vm11 = vcmp.gt.f32.partialorder %v3603_v31, 0.0 }
 0x176   : > { %2477 = vmatpush3.xpose.msk.msra.mxu0 %vm798_vm1, %v739_v24 }
 0x177   : > { %2478 = vmatprep.subr.msk.mxu0 %vm798_vm1, %v2435_v20 }
 0x17a   : > { %2479 = vmatpush3.xpose.msk.msra.mxu0 %vm798_vm1, %v2435_v20 }
 0x17b   : > { %2480 = vmatprep.subr.msk.mxu0 %vm798_vm1, %v729_v21 }
 0x17e   : > { %2481 = vmatpush3.xpose.msk.msra.mxu0 %vm798_vm1, %v729_v21 }
 0x17f   : > { %2482 = vmatprep.subr.msk.mxu0 %vm798_vm1, %v2432_v18 }
 0x182   : > { %2483 = vmatpush3.xpose.msk.msra.mxu0 %vm798_vm1, %v2432_v18  ;;  %v2189_v18 = vunpack.c.l.bf16 %v3187_v11 }
 0x183   : > { %2484 = vmatprep.subr.msk.mxu0 %vm798_vm1, %v719_v19 }
 0x184   : > { %vm1078_vm9 = vcmp.gt.f32.partialorder %v2189_v18, 0.0 }
 0x186   : > { %2485 = vmatpush3.xpose.msk.msra.mxu0 %vm798_vm1, %v719_v19 }
 0x189   : > { %2487 = vmatmul.mubr.msk.f32.vlgmr.msra.gmra.mxu0 %vm798_vm1, %v2376_v25 }
 0x18a   : > { %2489 = vmatprep.mubr.msk.f32.mxu0 %vm798_vm1, %v568_v37 }
 0x18d   : > { %2490 = vmatmul.mubr.msk.f32.gmra.mxu0 %vm798_vm1, %v2379_v36 }
 0x18e   : > { %2492 = vmatprep.mubr.msk.f32.mxu0 %vm798_vm1, %v578_v39  ;;  %v2784_v39 = vmov 0  }
 0x18f   : > { %2626 = vset.pattern.permute.xlu0 %v2784_v39  ;;  %2627 = vset.pattern.permute.xlu1 %v2784_v39 }
 0x191   : > { %2493 = vmatmul.mubr.msk.f32.gmra.mxu0 %vm798_vm1, %v2382_v38 }
 0x192   : > { %2495 = vmatprep.mubr.msk.f32.mxu0 %vm798_vm1, %v588_v41  ;;  %v3602_v41 = vunpack.c.h.bf16 %v3219_v34 }
 0x194   : > { %vm1083_vm12 = vcmp.gt.f32.partialorder %v3602_v41, 0.0  ;;  %v3336_v41 = vld [vmem:[#allocation2 + $0x70] sm:$0xff] }
 0x195   : > { %2496 = vmatmul.mubr.msk.f32.gmra.mxu0 %vm798_vm1, %v2385_v40 }
 0x196   : > { %2498 = vmatprep.mubr.msk.f32.mxu0 %vm798_vm1, %v598_v43 }
 0x199   : > { %2499 = vmatmul.mubr.msk.f32.gmra.mxu0 %vm798_vm1, %v2388_v42  ;;  %v3601_v42 = vunpack.c.l.bf16 %v3219_v34 }
 0x19a   : > { %2501 = vmatprep.mubr.msk.f32.mxu0 %vm798_vm1, %v608_v45  ;;  %v3234_v45 = vld [vmem:[%s2914_s14 + $0x30] sm:$0xff]  }
 0x19b   : > { %vm1082_vm13 = vcmp.gt.f32.partialorder %v3601_v42, 0.0  ;;  %v3327_v42 = vld [vmem:[#allocation2 + $0x60] sm:$0xff] }
 0x19d   : > { %2502 = vmatmul.mubr.msk.f32.gmra.mxu0 %vm798_vm1, %v2391_v44 }
 0x19e   : > { %2504 = vmatprep.mubr.msk.f32.mxu0 %vm798_vm1, %v618_v47 }
 0x1a1   : > { %2505 = vmatmul.mubr.msk.f32.gmra.mxu0 %vm798_vm1, %v2394_v46 }
 0x1a2   : > { %2507 = vmatprep.mubr.msk.f32.mxu0 %vm798_vm1, %v628_v49 }
 0x1a5   : > { %2508 = vmatmul.mubr.msk.f32.gmra.mxu0 %vm798_vm1, %v2397_v48 }
 0x249   : > { %v2488_v52 = vpop.f32.mrf.mxu0 }
 0x24a   : > { %v1089_v56 = vmul.f32 0.01, %v2488_v52 }
 0x24b   : > { %v961_v54 = vpop.f32.mrf.mxu0 }
 0x24c   : > { %v1088_v57 = vmul.f32 0.01, %v961_v54  ;;  %v1105_v1 = vmax.f32 %v2488_v52, %v1089_v56  ;;  %v3600_v56 = vunpack.c.h.bf16 %v3234_v45 }
 0x24d   : > { %v2491_v58 = vpop.f32.mrf.mxu0 }
 0x24e   : > { %v1104_v60 = vmax.f32 %v961_v54, %v1088_v57  ;;  %v1091_v61 = vmul.f32 0.01, %v2491_v58  ;;  %v3192_v14 = vsel %vm1073_vm4, %v1105_v1, -1e+30  ;;  %v3599_v57 = vunpack.c.l.bf16 %v3234_v45 }
 0x24f   : > { %v971_v63 = vpop.f32.mrf.mxu0  ;;  %vm1085_vm14 = vcmp.gt.f32.partialorder %v3600_v56, 0.0 }
 0x250   : > { %v1107_v2 = vmax.f32 %v2491_v58, %v1091_v61  ;;  %v1090_v3 = vmul.f32 0.01, %v971_v63  ;;  %v3177_v4 = vsel %vm1072_vm2, %v1104_v60, -1e+30  ;;  %v3249_v61 = vld [vmem:[%s2914_s14 + $0x38] sm:$0xff]   ;;  %vm1084_vm15 = vcmp.gt.f32.partialorder %v3599_v57, 0.0 }
 0x251   : > { %1152 = vmax.xlane.f32.xlu0 %v3177_v4  ;;  %v2494_v5 = vpop.f32.mrf.mxu0  ;;  %vm1472_vm2 = vcmask 7168  }
 0x252   : > { %v1106_v8 = vmax.f32 %v971_v63, %v1090_v3  ;;  %v3184_v9 = vsel %vm1075_vm3, %v1107_v2, -1e+30  ;;  %v1093_v10 = vmul.f32 0.01, %v2494_v5 }
 0x253   : > { %1158 = vmax.xlane.f32.xlu1 %v3184_v9  ;;  %v981_v12 = vpop.f32.mrf.mxu0 }
 0x254   : > { %v1109_v13 = vmax.f32 %v2494_v5, %v1093_v10  ;;  %v1092_v15 = vmul.f32 0.01, %v981_v12  ;;  %v3201_v20 = vsel %vm1074_vm5, %v1106_v8, -1e+30  ;;  %v3598_v10 = vunpack.c.h.bf16 %v3249_v61 }
 0x255   : > { %1154 = vmax.xlane.f32.xlu0 %v3192_v14  ;;  %v2497_v16 = vpop.f32.mrf.mxu0 }
 0x256   : > { %v1108_v19 = vmax.f32 %v981_v12, %v1092_v15  ;;  %v1095_v21 = vmul.f32 0.01, %v2497_v16  ;;  %v3207_v26 = vsel %vm1077_vm6, %v1109_v13, -1e+30  ;;  %v3597_v12 = vunpack.c.l.bf16 %v3249_v61 }
 0x257   : > { %1156 = vmax.xlane.f32.xlu1 %v3201_v20  ;;  %v991_v24 = vpop.f32.mrf.mxu0  ;;  %vm1087_vm0 = vcmp.gt.f32.partialorder %v3598_v10, 0.0 }
 0x258   : > { %v1111_v25 = vmax.f32 %v2497_v16, %v1095_v21  ;;  %v1094_v27 = vmul.f32 0.01, %v991_v24  ;;  %v3209_v28 = vsel %vm1076_vm7, %v1108_v19, -1e+30  ;;  %vm1086_vm1 = vcmp.gt.f32.partialorder %v3597_v12, 0.0 }
 0x259   : > { %1160 = vmax.xlane.f32.xlu0 %v3209_v28  ;;  %v2500_v29 = vpop.f32.mrf.mxu0 }
 0x25a   : > { %v1110_v32 = vmax.f32 %v991_v24, %v1094_v27  ;;  %v1097_v33 = vmul.f32 0.01, %v2500_v29  ;;  %v3222_v36 = vsel %vm1079_vm8, %v1111_v25, -1e+30 }
 0x25b   : > { %1162 = vmax.xlane.f32.xlu1 %v3207_v26  ;;  %v1001_v22 = vpop.f32.mrf.mxu0 }
 0x25c   : > { %v1113_v35 = vmax.f32 %v2500_v29, %v1097_v33  ;;  %v1096_v37 = vmul.f32 0.01, %v1001_v22  ;;  %v3224_v38 = vsel %vm1078_vm9, %v1110_v32, -1e+30  ;;  %v1136_v33 = vld [vmem:[#allocation2] sm:$0xff] }
 0x25d   : > { %v2503_v40 = vpop.f32.mrf.mxu0  ;;  %1164 = vmax.xlane.f32.xlu0 %v3224_v38 }
 0x25e   : > { %v1112_v43 = vmax.f32 %v1001_v22, %v1096_v37  ;;  %v1099_v44 = vmul.f32 0.01, %v2503_v40  ;;  %v3237_v48 = vsel %vm1081_vm10, %v1113_v35, -1e+30  ;;  %v1139_v35 = vld [vmem:[#allocation2 + $0x18] sm:$0xff] }
 0x25f   : > { %1166 = vmax.xlane.f32.xlu1 %v3222_v36  ;;  %v1011_v46 = vpop.f32.mrf.mxu0 }
 0x260   : > { %v1115_v47 = vmax.f32 %v2503_v40, %v1099_v44  ;;  %v1098_v49 = vmul.f32 0.01, %v1011_v46  ;;  %v3239_v52 = vsel %vm1080_vm11, %v1112_v43, -1e+30  ;;  %v3280_v40 = vld [vmem:[#allocation2 + $0x8] sm:$0xff] }
 0x261   : > { %v2506_v54 = vpop.f32.mrf.mxu0  ;;  %1168 = vmax.xlane.f32.xlu0 %v3239_v52 }
 0x262   : > { %v1114_v58 = vmax.f32 %v1011_v46, %v1098_v49  ;;  %v1101_v60 = vmul.f32 0.01, %v2506_v54  ;;  %v3252_v2 = vsel %vm1083_vm12, %v1115_v47, -1e+30  ;;  %v3283_v46 = vld [vmem:[#allocation2 + $0x10] sm:$0xff] }
 0x263   : > { %1170 = vmax.xlane.f32.xlu1 %v3237_v48  ;;  %v1021_v63 = vpop.f32.mrf.mxu0 }
 0x264   : > { %v1117_v1 = vmax.f32 %v2506_v54, %v1101_v60  ;;  %v1100_v3 = vmul.f32 0.01, %v1021_v63  ;;  %v3254_v5 = vsel %vm1082_vm13, %v1114_v58, -1e+30  ;;  %v3289_v54 = vld [vmem:[#allocation2 + $0x20] sm:$0xff]  ;;  %v1141_v60 = vld [vmem:[#allocation2 + $0x28] sm:$0xff] }
 0x265   : > { %v2509_v8 = vpop.f32.mrf.mxu0  ;;  %1172 = vmax.xlane.f32.xlu0 %v3254_v5 }
 0x266   : > { %v1116_v13 = vmax.f32 %v1021_v63, %v1100_v3  ;;  %v1103_v15 = vmul.f32 0.01, %v2509_v8  ;;  %v3264_v21 = vsel %vm1085_vm14, %v1117_v1, -1e+30 }
 0x267   : > { %1174 = vmax.xlane.f32.xlu1 %v3252_v2  ;;  %v1031_v16 = vpop.f32.mrf.mxu0 }
 0x268   : > { %v1119_v19 = vmax.f32 %v2509_v8, %v1103_v15  ;;  %v1102_v24 = vmul.f32 0.01, %v1031_v16  ;;  %v3266_v25 = vsel %vm1084_vm15, %v1116_v13, -1e+30  ;;  %v3302_v8 = vld [vmem:[#allocation2 + $0x30] sm:$0xff]  ;;  %v1143_v15 = vld [vmem:[#allocation2 + $0x38] sm:$0xff] }
 0x269   : > { %1176 = vmax.xlane.f32.xlu0 %v3266_v25 }
 0x26a   : > { %v1118_v27 = vmax.f32 %v1031_v16, %v1102_v24  ;;  %v3274_v29 = vsel %vm1087_vm0, %v1119_v19, -1e+30 }
 0x26b   : > { %1178 = vmax.xlane.f32.xlu1 %v3264_v21 }
 0x26c   : > { %v3276_v32 = vsel %vm1086_vm1, %v1118_v27, -1e+30  ;;  %v3310_v27 = vld [vmem:[#allocation2 + $0x40] sm:$0xff] }
 0x26d   : > { %1180 = vmax.xlane.f32.xlu0 %v3276_v32 }
 0x26f   : > { %1182 = vmax.xlane.f32.xlu1 %v3274_v29 }
 0x2da   : > { %v1153_v22 = vpop.xlane.xlu0 %1152 }
 0x2db   : > { %v1184_v37 = vmax.f32 %v1136_v33, %v1153_v22 }
 0x2dc   : > { %v1159_v39 = vpop.xlane.xlu1 %1158 }
 0x2dd   : > { %1778 = vst.msk [vmem:[#allocation2] sm:$0xff] %vm1472_vm2, %v1184_v37  ;;  %v1187_v43 = vmax.f32 %v1139_v35, %v1159_v39  ;;  %1250 = vperm.xlu0 %2626, %v1184_v37   ;;  %v1200_v22 = vsub.f32 %v1136_v33, %v1184_v37  ;;  %v1147_v33 = vld [vmem:[#allocation2 + $0x58] sm:$0xff] }
 0x2de   : > { %v1155_v44 = vpop.xlane.xlu0 %1154 }
 0x2df   : > { %1781 = vst.msk [vmem:[#allocation2 + $0x18] sm:$0xff] %vm1472_vm2, %v1187_v43  ;;  %v3287_v47 = vmax.f32 %v3280_v40, %v1155_v44  ;;  %v1145_v44 = vld [vmem:[#allocation2 + $0x48] sm:$0xff]  ;;  %v1216_v12 = vmul.f32 1.442695, %v1200_v22  ;;  %v1203_v10 = vsub.f32 %v1139_v35, %v1187_v43 }
 0x2e0   : > { %v1157_v49 = vpop.xlane.xlu1 %1156 }
 0x2e1   : > { %1779 = vst.msk [vmem:[#allocation2 + $0x8] sm:$0xff] %vm1472_vm2, %v3287_v47  ;;  %v3294_v58 = vmax.f32 %v3283_v46, %v1157_v49  ;;  %1255 = vperm.xlu1 %2627, %v3287_v47   ;;  %2628 = vpow2.f32 %v1216_v12  ;;  %v1222_v22 = vmul.f32 1.442695, %v1203_v10  ;;  %v3340_v12 = vld [vmem:[#allocation2 + $0x78] sm:$0xff]  ;;  %v1201_v30 = vsub.f32 %v3280_v40, %v3287_v47 }
 0x2e2   : > { %v1161_v63 = vpop.xlane.xlu0 %1160 }
 0x2e3   : > { %1780 = vst.msk [vmem:[#allocation2 + $0x10] sm:$0xff] %vm1472_vm2, %v3294_v58  ;;  %v3300_v1 = vmax.f32 %v3289_v54, %v1161_v63  ;;  %2630 = vpow2.f32 %v1222_v22  ;;  %v1218_v40 = vmul.f32 1.442695, %v1201_v30 }
 0x2e4   : > { %v1163_v3 = vpop.xlane.xlu1 %1162 }
 0x2e5   : > { %v1189_v13 = vmax.f32 %v1141_v60, %v1163_v3  ;;  %1782 = vst.msk [vmem:[#allocation2 + $0x20] sm:$0xff] %vm1472_vm2, %v3300_v1  ;;  %1265 = vperm.xlu1 %2627, %v1187_v43   ;;  %v1149_v43 = vld [vmem:[#allocation2 + $0x68] sm:$0xff] }
 0x2e6   : > { %v1165_v16 = vpop.xlane.xlu0 %1164 }
 0x2e7   : > { %1783 = vst.msk [vmem:[#allocation2 + $0x28] sm:$0xff] %vm1472_vm2, %v1189_v13  ;;  %v3308_v19 = vmax.f32 %v3302_v8, %v1165_v16  ;;  %v3319_v16 = vld [vmem:[#allocation2 + $0x50] sm:$0xff] }
 0x2e8   : > { %v1167_v24 = vpop.xlane.xlu1 %1166 }
 0x2e9   : > { %v1191_v39 = vmax.f32 %v1143_v15, %v1167_v24  ;;  %1260 = vperm.xlu1 %2627, %v3294_v58   ;;  %1784 = vst.msk [vmem:[#allocation2 + $0x30] sm:$0xff] %vm1472_vm2, %v3308_v19 }
 0x2ea   : > { %v1169_v49 = vpop.xlane.xlu0 %1168 }
 0x2eb   : > { %1785 = vst.msk [vmem:[#allocation2 + $0x38] sm:$0xff] %vm1472_vm2, %v1191_v39  ;;  %v3317_v63 = vmax.f32 %v3310_v27, %v1169_v49  ;;  %v1205_v49 = vsub.f32 %v1141_v60, %v1189_v13  ;;  %v1207_v10 = vsub.f32 %v1143_v15, %v1191_v39 }
 0x2ec   : > { %v1171_v3 = vpop.xlane.xlu1 %1170 }
 0x2ed   : > { %v1193_v57 = vmax.f32 %v1145_v44, %v1171_v3  ;;  %1275 = vperm.xlu1 %2627, %v1189_v13   ;;  %1786 = vst.msk [vmem:[#allocation2 + $0x40] sm:$0xff] %vm1472_vm2, %v3317_v63  ;;  %v1226_v60 = vmul.f32 1.442695, %v1205_v49  ;;  %v1230_v15 = vmul.f32 1.442695, %v1207_v10 }
 0x2ee   : > { %v1173_v37 = vpop.xlane.xlu0 %1172 }
 0x2ef   : > { %1787 = vst.msk [vmem:[#allocation2 + $0x48] sm:$0xff] %vm1472_vm2, %v1193_v57  ;;  %1295 = vperm.xlu0 %2626, %v1193_v57   ;;  %v3325_v24 = vmax.f32 %v3319_v16, %v1173_v37  ;;  %2632 = vpow2.f32 %v1226_v60  ;;  %v3364_v60 = vpop.eup %2628 }
 0x2f0   : > { %v1175_v56 = vpop.xlane.xlu1 %1174  ;;  %2634 = vpow2.f32 %v1230_v15 }
 0x2f1   : > { %v1195_v35 = vmax.f32 %v1147_v33, %v1175_v56  ;;  %1270 = vperm.xlu1 %2627, %v3300_v1   ;;  %1788 = vst.msk [vmem:[#allocation2 + $0x50] sm:$0xff] %vm1472_vm2, %v3325_v24  ;;  %2636 = vpow2.f32 %v1218_v40 }
 0x2f2   : > { %v1177_v3 = vpop.xlane.xlu0 %1176 }
 0x2f3   : > { %1789 = vst.msk [vmem:[#allocation2 + $0x58] sm:$0xff] %vm1472_vm2, %v1195_v35  ;;  %1305 = vperm.xlu0 %2626, %v1195_v35   ;;  %v3334_v37 = vmax.f32 %v3327_v42, %v1177_v3  ;;  %v1209_v3 = vsub.f32 %v1145_v44, %v1193_v57  ;;  %v1211_v44 = vsub.f32 %v1147_v33, %v1195_v35 }
 0x2f4   : > { %v1179_v13 = vpop.xlane.xlu1 %1178  ;;  %v1206_v35 = vsub.f32 %v3302_v8, %v3308_v19 }
 0x2f5   : > { %v1197_v56 = vmax.f32 %v1149_v43, %v1179_v13  ;;  %1285 = vperm.xlu1 %2627, %v1191_v39   ;;  %1790 = vst.msk [vmem:[#allocation2 + $0x60] sm:$0xff] %vm1472_vm2, %v3334_v37  ;;  %v1234_v57 = vmul.f32 1.442695, %v1209_v3 }
 0x2f6   : > { %v1181_v31 = vpop.xlane.xlu0 %1180 }
 0x2f7   : > { %1791 = vst.msk [vmem:[#allocation2 + $0x68] sm:$0xff] %vm1472_vm2, %v1197_v56  ;;  %1315 = vperm.xlu0 %2626, %v1197_v56   ;;  %v3346_v49 = vmax.f32 %v3336_v41, %v1181_v31  ;;  %v1202_v31 = vsub.f32 %v3283_v46, %v3294_v58  ;;  %v1204_v46 = vsub.f32 %v3289_v54, %v3300_v1  ;;  %2638 = vpow2.f32 %v1234_v57 }
 0x2f8   : > { %v1183_v22 = vpop.xlane.xlu1 %1182  ;;  %v1238_v58 = vmul.f32 1.442695, %v1211_v44  ;;  %v1213_v10 = vsub.f32 %v1149_v43, %v1197_v56  ;;  %v1228_v1 = vmul.f32 1.442695, %v1206_v35  ;;  %v1208_v43 = vsub.f32 %v3310_v27, %v3317_v63 }
 0x2f9   : > { %v3349_v39 = vmax.f32 %v3340_v12, %v1183_v22  ;;  %1280 = vperm.xlu1 %2627, %v3308_v19   ;;  %v1214_v13 = vsub.f32 %v3336_v41, %v3346_v49  ;;  %1792 = vst.msk [vmem:[#allocation2 + $0x70] sm:$0xff] %vm1472_vm2, %v3346_v49  ;;  %v1220_v30 = vmul.f32 1.442695, %v1202_v31  ;;  %v3370_v22 = vpop.eup %2630  ;;  %v1224_v33 = vmul.f32 1.442695, %v1204_v46 }
 0x2fa   : > { %v1242_v54 = vmul.f32 1.442695, %v1213_v10  ;;  %v1232_v8 = vmul.f32 1.442695, %v1208_v43  ;;  %v1210_v19 = vsub.f32 %v3319_v16, %v3325_v24 }
 0x2fb   : > { %1793 = vst.msk [vmem:[#allocation2 + $0x78] sm:$0xff] %vm1472_vm2, %v3349_v39  ;;  %1325 = vperm.xlu0 %2626, %v3349_v39   ;;  %2640 = vpow2.f32 %v1220_v30 }
 0x2fc   : > { %v3375_v15 = vpop.eup %2632  ;;  %2642 = vpow2.f32 %v1238_v58  ;;  %v1236_v27 = vmul.f32 1.442695, %v1210_v19 }
 0x2fd   : > { %1290 = vperm.xlu1 %2627, %v3317_v63   ;;  %2644 = vpow2.f32 %v1224_v33  ;;  %v3382_v56 = vpop.eup %2634  ;;  %v1212_v63 = vsub.f32 %v3327_v42, %v3334_v37 }
 0x2fe   : > { %2646 = vpow2.f32 %v1242_v54  ;;  %v3387_v3 = vpop.eup %2636 }
 0x2ff   : > { %1507 = vperm.xlu0 %2626, %v3364_v60   ;;  %2648 = vpow2.f32 %v1228_v1 }
 0x300   : > { %2650 = vpow2.f32 %v1232_v8 }
 0x301   : > { %1300 = vperm.xlu1 %2627, %v3325_v24   ;;  %2652 = vpow2.f32 %v1236_v27  ;;  %v1240_v24 = vmul.f32 1.442695, %v1212_v63 }
 0x303   : > { %1522 = vperm.xlu0 %2626, %v3370_v22   ;;  %2654 = vpow2.f32 %v1240_v24 }
 0x304   : > { %v3390_v40 = vpop.eup %2638 }
 0x305   : > { %1310 = vperm.xlu1 %2627, %v3334_v37  }
 0x307   : > { %1532 = vperm.xlu0 %2626, %v3375_v15  }
 0x308   : > { %v3395_v31 = vpop.eup %2640 }
 0x309   : > { %1320 = vperm.xlu1 %2627, %v3346_v49   ;;  %v3398_v16 = vpop.eup %2642 }
 0x30a   : > { %v3401_v57 = vpop.eup %2644 }
 0x30b   : > { %1542 = vperm.xlu0 %2626, %v3382_v56   ;;  %v3404_v44 = vpop.eup %2646 }
 0x30c   : > { %v3407_v42 = vpop.eup %2648 }
 0x30d   : > { %1512 = vperm.xlu1 %2627, %v3387_v3   ;;  %v3410_v37 = vpop.eup %2650 }
 0x30e   : > { %v3413_v30 = vpop.eup %2652 }
 0x30f   : > { %1552 = vperm.xlu0 %2626, %v3390_v40  }
 0x310   : > { %v3416_v46 = vpop.eup %2654 }
 0x311   : > { %1517 = vperm.xlu1 %2627, %v3395_v31  }
 0x313   : > { %1562 = vperm.xlu0 %2626, %v3398_v16  }
 0x315   : > { %1527 = vperm.xlu1 %2627, %v3401_v57  }
 0x317   : > { %1572 = vperm.xlu0 %2626, %v3404_v44  }
 0x319   : > { %1537 = vperm.xlu1 %2627, %v3407_v42  }
 0x31d   : > { %1547 = vperm.xlu1 %2627, %v3410_v37  }
 0x321   : > { %1557 = vperm.xlu1 %2627, %v3413_v30  }
 0x325   : > { %1567 = vperm.xlu1 %2627, %v3416_v46  }
 0x358   : > { %v1251_v58 = vpop.permute.xlu0 %1250 }
 0x359   : > { %v1328_v10 = vsub.f32 %v3177_v4, %v1251_v58 }
 0x35b   : > { %v1344_v33 = vmul.f32 1.442695, %v1328_v10 }
 0x35c   : > { %v1256_v35 = vpop.permute.xlu1 %1255 }
 0x35d   : > { %2656 = vpow2.f32 %v1344_v33  ;;  %v1329_v54 = vsub.f32 %v3192_v14, %v1256_v35 }
 0x35f   : > { %v1346_v1 = vmul.f32 1.442695, %v1329_v54 }
 0x360   : > { %v1266_v43 = vpop.permute.xlu1 %1265 }
 0x361   : > { %2658 = vpow2.f32 %v1346_v1  ;;  %v1331_v8 = vsub.f32 %v3184_v9, %v1266_v43 }
 0x363   : > { %v1350_v19 = vmul.f32 1.442695, %v1331_v8 }
 0x364   : > { %v1261_v27 = vpop.permute.xlu1 %1260 }
 0x365   : > { %2660 = vpow2.f32 %v1350_v19  ;;  %v1330_v63 = vsub.f32 %v3201_v20, %v1261_v27 }
 0x367   : > { %v1348_v24 = vmul.f32 1.442695, %v1330_v63 }
 0x368   : > { %v1276_v47 = vpop.permute.xlu1 %1275 }
 0x369   : > { %2662 = vpow2.f32 %v1348_v24  ;;  %v1333_v4 = vsub.f32 %v3207_v26, %v1276_v47 }
 0x36a   : > { %v2657_v58 = vpop.eup %2656  ;;  %v1296_v10 = vpop.permute.xlu0 %1295 }
 0x36b   : > { %v1354_v33 = vmul.f32 1.442695, %v1333_v4  ;;  %v1376_v14 = vmul.f32 %v2657_v58, %v2177_v53  ;;  %v1337_v26 = vsub.f32 %v3237_v48, %v1296_v10 }
 0x36c   : > { %v1271_v35 = vpop.permute.xlu1 %1270 }
 0x36d   : > { %2664 = vpow2.f32 %v1354_v33  ;;  %v1332_v9 = vsub.f32 %v3209_v28, %v1271_v35  ;;  %1424 = vadd.xlane.f32.xlu1 %v1376_v14  ;;  %2542 = vmatprep.mubr.f32.mxu1 %v1376_v14  ;;  %v1362_v63 = vmul.f32 1.442695, %v1337_v26 }
 0x36e   : > { %v2659_v54 = vpop.eup %2658  ;;  %v1306_v1 = vpop.permute.xlu0 %1305 }
 0x36f   : > { %v1352_v20 = vmul.f32 1.442695, %v1332_v9  ;;  %v1377_v43 = vmul.f32 %v2659_v54, %v2178_v59  ;;  %v1339_v24 = vsub.f32 %v3252_v2, %v1306_v1 }
 0x370   : > { %v1286_v47 = vpop.permute.xlu1 %1285 }
 0x371   : > { %2666 = vpow2.f32 %v1352_v20  ;;  %v1335_v8 = vsub.f32 %v3222_v36, %v1286_v47  ;;  %1426 = vadd.xlane.f32.xlu0 %v1377_v43  ;;  %2543 = vmatmul.mubr.f32.vlgmr.msra.gmra.mxu1 %v1377_v43  ;;  %v1366_v58 = vmul.f32 1.442695, %v1339_v24 }
 0x372   : > { %v2661_v53 = vpop.eup %2660  ;;  %v1316_v27 = vpop.permute.xlu0 %1315 }
 0x373   : > { %v1358_v19 = vmul.f32 1.442695, %v1335_v8  ;;  %v1379_v28 = vmul.f32 %v2661_v53, %v2182_v55  ;;  %v1341_v10 = vsub.f32 %v3264_v21, %v1316_v27 }
 0x374   : > { %v1281_v4 = vpop.permute.xlu1 %1280 }
 0x375   : > { %2668 = vpow2.f32 %v1358_v19  ;;  %v1334_v50 = vsub.f32 %v3224_v38, %v1281_v4  ;;  %1430 = vadd.xlane.f32.xlu1 %v1379_v28  ;;  %v1370_v51 = vmul.f32 1.442695, %v1341_v10  ;;  %v3605_v19 = vunpack.c.h.bf16 %v3204_v23 }
 0x376   : > { %v2663_v59 = vpop.eup %2662  ;;  %2670 = vpow2.f32 %v1362_v63  ;;  %v1326_v55 = vpop.permute.xlu0 %1325  ;;  %v3606_v63 = vunpack.c.l.bf16 %v3204_v23  ;;  %v3610_v10 = vunpack.c.l.bf16 %v3234_v45 }
 0x377   : > { %v1356_v48 = vmul.f32 1.442695, %v1334_v50  ;;  %v1378_v36 = vmul.f32 %v2663_v59, %v2181_v0  ;;  %v1343_v0 = vsub.f32 %v3274_v29, %v1326_v55  ;;  %v3611_v55 = vunpack.c.h.bf16 %v3249_v61 }
 0x378   : > { %v1291_v33 = vpop.permute.xlu1 %1290 }
 0x379   : > { %2672 = vpow2.f32 %v1356_v48  ;;  %v1336_v14 = vsub.f32 %v3239_v52, %v1291_v33  ;;  %1428 = vadd.xlane.f32.xlu0 %v1378_v36  ;;  %2545 = vmatprep.mubr.f32.mxu1 %v1378_v36  ;;  %v1374_v20 = vmul.f32 1.442695, %v1343_v0  ;;  %v3609_v48 = vunpack.c.h.bf16 %v3234_v45 }
 0x37a   : > { %v2665_v2 = vpop.eup %2664  ;;  %2546 = vmatmul.mubr.f32.gmra.mxu1 %v1379_v28  ;;  %2674 = vpow2.f32 %v1366_v58  ;;  %v3613_v45 = vsub.f32 %v3340_v12, %v3349_v39 }
 0x37b   : > { %v1360_v38 = vmul.f32 1.442695, %v1336_v14  ;;  %v1381_v35 = vmul.f32 %v2665_v2, %v2186_v6 }
 0x37c   : > { %v1301_v9 = vpop.permute.xlu1 %1300 }
 0x37d   : > { %2676 = vpow2.f32 %v1360_v38  ;;  %v1338_v21 = vsub.f32 %v3254_v5, %v1301_v9  ;;  %1434 = vadd.xlane.f32.xlu1 %v1381_v35  ;;  %v3612_v38 = vunpack.c.l.bf16 %v3249_v61  ;;  %v3481_v61 = vpop.permute.xlu0 %1507 }
 0x37e   : > { %v2667_v54 = vpop.eup %2666  ;;  %2678 = vpow2.f32 %v1370_v51  ;;  %v1246_v51 = vmul.f32 1.442695, %v3613_v45 }
 0x37f   : > { %v1364_v1 = vmul.f32 1.442695, %v1338_v21  ;;  %v1380_v52 = vmul.f32 %v2667_v54, %v2185_v7 }
 0x380   : > { %v1311_v43 = vpop.permute.xlu1 %1310 }
 0x381   : > { %2680 = vpow2.f32 %v1364_v1  ;;  %v1340_v6 = vsub.f32 %v3266_v25, %v1311_v43  ;;  %1432 = vadd.xlane.f32.xlu0 %v1380_v52  ;;  %2548 = vmatprep.mubr.f32.mxu1 %v1380_v52  ;;  %v3485_v9 = vpop.permute.xlu0 %1522 }
 0x382   : > { %v2669_v26 = vpop.eup %2668  ;;  %2549 = vmatmul.mubr.f32.gmra.mxu1 %v1381_v35  ;;  %2682 = vpow2.f32 %v1374_v20 }
 0x383   : > { %v1368_v29 = vmul.f32 1.442695, %v1340_v6  ;;  %v1383_v5 = vmul.f32 %v2669_v26, %v2190_v17  ;;  %v2671_v8 = vpop.eup %2670  ;;  %v1392_v26 = vld [vmem:[#allocation3] sm:$0xff] }
 0x384   : > { %v1321_v47 = vpop.permute.xlu1 %1320  ;;  %v1385_v27 = vmul.f32 %v2671_v8, %v3605_v19  ;;  %v1393_v8 = vld [vmem:[#allocation3 + $0x8] sm:$0xff] }
 0x385   : > { %2684 = vpow2.f32 %v1368_v29  ;;  %v1342_v62 = vsub.f32 %v3276_v32, %v1321_v47  ;;  %1438 = vadd.xlane.f32.xlu1 %v1383_v5  ;;  %v3607_v32 = vunpack.c.h.bf16 %v3219_v34  ;;  %v3489_v12 = vpop.permute.xlu0 %1532  ;;  %v1408_v29 = vmul.f32 %v3364_v60, %v1392_v26  ;;  %v1402_v26 = vld [vmem:[#allocation3 + $0x50] sm:$0xff] }
 0x386   : > { %v2673_v7 = vpop.eup %2672 }
 0x387   : > { %v1372_v53 = vmul.f32 1.442695, %v1342_v62  ;;  %v1382_v25 = vmul.f32 %v2673_v7, %v2189_v18  ;;  %v2675_v28 = vpop.eup %2674  ;;  %v3608_v18 = vunpack.c.l.bf16 %v3219_v34  ;;  %v1244_v34 = vmul.f32 1.442695, %v1214_v13 }
 0x388   : > { %v1387_v4 = vmul.f32 %v2675_v28, %v3607_v32  ;;  %v3479_v49 = vpop.permute.xlu1 %1512  ;;  %v1409_v7 = vmul.f32 %v3387_v3, %v1393_v8  ;;  %v1397_v32 = vld [vmem:[#allocation3 + $0x28] sm:$0xff]  ;;  %v1418_v8 = vmul.f32 %v3413_v30, %v1402_v26  ;;  %v1406_v30 = vld [vmem:[#allocation3 + $0x70] sm:$0xff]  ;;  %v1497_v26 = vld [vmem:[#allocation4 + $0x40] sm:$0xff] }
 0x389   : > { %2686 = vpow2.f32 %v1372_v53  ;;  %1436 = vadd.xlane.f32.xlu0 %v1382_v25  ;;  %2551 = vmatprep.mubr.f32.mxu1 %v1382_v25  ;;  %v3493_v54 = vpop.permute.xlu0 %1542  ;;  %v1395_v25 = vld [vmem:[#allocation3 + $0x18] sm:$0xff]  ;;  %v1413_v3 = vmul.f32 %v3375_v15, %v1397_v32 }
 0x38a   : > { %v2677_v17 = vpop.eup %2676  ;;  %1442 = vadd.xlane.f32.xlu1 %v1385_v27  ;;  %2552 = vmatmul.mubr.f32.gmra.mxu1 %v1383_v5  ;;  %2688 = vpow2.f32 %v1244_v34  ;;  %v1400_v34 = vld [vmem:[#allocation3 + $0x40] sm:$0xff] }
 0x38b   : > { %v1384_v24 = vmul.f32 %v2677_v17, %v3606_v63  ;;  %v2679_v50 = vpop.eup %2678  ;;  %2690 = vpow2.f32 %v1246_v51  ;;  %v1394_v17 = vld [vmem:[#allocation3 + $0x10] sm:$0xff] }
 0x38c   : > { %v1389_v36 = vmul.f32 %v2679_v50, %v3609_v48  ;;  %v3483_v13 = vpop.permute.xlu1 %1517  ;;  %v1410_v60 = vmul.f32 %v3395_v31, %v1394_v17  ;;  %v1399_v48 = vld [vmem:[#allocation3 + $0x38] sm:$0xff] }
 0x38d   : > { %1440 = vadd.xlane.f32.xlu0 %v1384_v24  ;;  %2554 = vmatprep.mubr.f32.mxu1 %v1384_v24  ;;  %v3497_v52 = vpop.permute.xlu0 %1552  ;;  %v1415_v31 = vmul.f32 %v3382_v56, %v1399_v48  ;;  %v1416_v56 = vmul.f32 %v3410_v37, %v1400_v34  ;;  %v1404_v37 = vld [vmem:[#allocation3 + $0x60] sm:$0xff]  ;;  %v1492_v48 = vld [vmem:[#allocation4 + $0x18] sm:$0xff] }
 0x38e   : > { %v2681_v11 = vpop.eup %2680  ;;  %1446 = vadd.xlane.f32.xlu1 %v1387_v4  ;;  %2555 = vmatmul.mubr.f32.gmra.mxu1 %v1385_v27  ;;  %v1411_v27 = vmul.f32 %v3370_v22, %v1395_v25 }
 0x38f   : > { %v1386_v59 = vmul.f32 %v2681_v11, %v3608_v18  ;;  %v2683_v58 = vpop.eup %2682  ;;  %v1396_v11 = vld [vmem:[#allocation3 + $0x20] sm:$0xff] }
 0x390   : > { %v1391_v14 = vmul.f32 %v2683_v58, %v3611_v55  ;;  %v3487_v21 = vpop.permute.xlu1 %1527  ;;  %v1412_v22 = vmul.f32 %v3401_v57, %v1396_v11 }
 0x391   : > { %1444 = vadd.xlane.f32.xlu0 %v1386_v59  ;;  %2557 = vmatprep.mubr.f32.mxu1 %v1386_v59  ;;  %v3501_v43 = vpop.permute.xlu0 %1562 }
 0x392   : > { %v2685_v23 = vpop.eup %2684  ;;  %1450 = vadd.xlane.f32.xlu1 %v1389_v36  ;;  %2558 = vmatmul.mubr.f32.gmra.mxu1 %v1387_v4 }
 0x393   : > { %v1388_v33 = vmul.f32 %v2685_v23, %v3610_v10  ;;  %v1398_v23 = vld [vmem:[#allocation3 + $0x30] sm:$0xff] }
 0x394   : > { %v3491_v39 = vpop.permute.xlu1 %1537  ;;  %v1414_v15 = vmul.f32 %v3407_v42, %v1398_v23 }
 0x395   : > { %1448 = vadd.xlane.f32.xlu0 %v1388_v33  ;;  %2560 = vmatprep.mubr.f32.mxu1 %v1388_v33  ;;  %v3506_v5 = vpop.permute.xlu0 %1572  ;;  %v1401_v33 = vld [vmem:[#allocation3 + $0x48] sm:$0xff] }
 0x396   : > { %v2687_v2 = vpop.eup %2686  ;;  %1454 = vadd.xlane.f32.xlu1 %v1391_v14  ;;  %2561 = vmatmul.mubr.f32.gmra.mxu1 %v1389_v36  ;;  %v1417_v55 = vmul.f32 %v3390_v40, %v1401_v33 }
 0x397   : > { %v1390_v35 = vmul.f32 %v2687_v2, %v3612_v38  ;;  %v3473_v0 = vpop.eup %2688  ;;  %v1403_v38 = vld [vmem:[#allocation3 + $0x58] sm:$0xff] }
 0x398   : > { %v3476_v41 = vpop.eup %2690  ;;  %v3495_v1 = vpop.permute.xlu1 %1547  ;;  %v1419_v45 = vmul.f32 %v3398_v16, %v1403_v38  ;;  %v1495_v38 = vld [vmem:[#allocation4 + $0x8] sm:$0xff] }
 0x399   : > { %1452 = vadd.xlane.f32.xlu0 %v1390_v35  ;;  %2563 = vmatprep.mubr.f32.mxu1 %v1390_v35 }
 0x39a   : > { %2564 = vmatmul.mubr.f32.gmra.mxu1 %v1391_v14 }
 0x39c   : > { %v3499_v20 = vpop.permute.xlu1 %1557 }
 0x3a0   : > { %v3503_v6 = vpop.permute.xlu1 %1567 }
 0x3a7   : > { %1577 = vperm.xlu1 %2627, %v3473_v0  }
 0x3af   : > { %1582 = vperm.xlu0 %2626, %v3476_v41  }
 0x3f6   : > { %v1425_v47 = vpop.xlane.xlu1 %1424 }
 0x3f7   : > { %v1456_v62 = vadd.f32 %v1425_v47, %v1408_v29  ;;  %v1405_v47 = vld [vmem:[#allocation3 + $0x68] sm:$0xff] }
 0x3f9   : > { %1473 = vst.msk [vmem:[#allocation3] sm:$0xff] %vm1472_vm2, %v1456_v62  ;;  %v1421_v62 = vmul.f32 %v3404_v44, %v1405_v47  ;;  %v1422_v44 = vmul.f32 %v3473_v0, %v1406_v30  ;;  %v1491_v0 = vld [vmem:[#allocation4 + $0x58] sm:$0xff] }
 0x3fa   : > { %v1427_v53 = vpop.xlane.xlu0 %1426 }
 0x3fb   : > { %v1457_v19 = vadd.f32 %v1427_v53, %v1409_v7 }
 0x3fd   : > { %1474 = vst.msk [vmem:[#allocation3 + $0x8] sm:$0xff] %vm1472_vm2, %v1457_v19  ;;  %v1407_v19 = vld [vmem:[#allocation3 + $0x78] sm:$0xff] }
 0x3fe   : > { %v1431_v28 = vpop.xlane.xlu1 %1430 }
 0x3ff   : > { %v1459_v63 = vadd.f32 %v1431_v28, %v1411_v27  ;;  %v1420_v27 = vmul.f32 %v3416_v46, %v1404_v37  ;;  %v1423_v28 = vmul.f32 %v3476_v41, %v1407_v19  ;;  %v1490_v46 = vld [vmem:[#allocation4] sm:$0xff] }
 0x400   : > { %v1501_v19 = vld [vmem:[#allocation4 + $0x60] sm:$0xff] }
 0x401   : > { %1476 = vst.msk [vmem:[#allocation3 + $0x18] sm:$0xff] %vm1472_vm2, %v1459_v63 }
 0x402   : > { %v1429_v24 = vpop.xlane.xlu0 %1428 }
 0x403   : > { %v1458_v4 = vadd.f32 %v1429_v24, %v1410_v60 }
 0x405   : > { %1475 = vst.msk [vmem:[#allocation3 + $0x10] sm:$0xff] %vm1472_vm2, %v1458_v4 }
 0x406   : > { %v1435_v50 = vpop.xlane.xlu1 %1434 }
 0x407   : > { %v1461_v18 = vadd.f32 %v1435_v50, %v1413_v3  ;;  %v1489_v3 = vld [vmem:[#allocation4 + $0x30] sm:$0xff]  ;;  %v1586_v50 = vmul.f32 %v3479_v49, %v1490_v46  ;;  %v1494_v49 = vld [vmem:[#allocation4 + $0x68] sm:$0xff] }
 0x408   : > { %v1585_v11 = vmul.f32 %v3481_v61, %v1489_v3  ;;  %v1590_v61 = vmul.f32 %v3489_v12, %v1494_v49 }
 0x409   : > { %1478 = vst.msk [vmem:[#allocation3 + $0x28] sm:$0xff] %vm1472_vm2, %v1461_v18 }
 0x40a   : > { %v1433_v59 = vpop.xlane.xlu0 %1432 }
 0x40b   : > { %v1460_v36 = vadd.f32 %v1433_v59, %v1412_v22 }
 0x40d   : > { %1477 = vst.msk [vmem:[#allocation3 + $0x20] sm:$0xff] %vm1472_vm2, %v1460_v36  ;;  %v1588_v36 = vmul.f32 %v3485_v9, %v1492_v48  ;;  %v1496_v9 = vld [vmem:[#allocation4 + $0x48] sm:$0xff] }
 0x40e   : > { %v1439_v58 = vpop.xlane.xlu1 %1438 }
 0x40f   : > { %v1463_v10 = vadd.f32 %v1439_v58, %v1415_v31  ;;  %v1587_v58 = vmul.f32 %v3483_v13, %v1491_v0  ;;  %v1592_v13 = vmul.f32 %v3493_v54, %v1496_v9 }
 0x411   : > { %1480 = vst.msk [vmem:[#allocation3 + $0x38] sm:$0xff] %vm1472_vm2, %v1463_v10 }
 0x412   : > { %v1437_v14 = vpop.xlane.xlu0 %1436 }
 0x413   : > { %v1443_v57 = vpop.xlane.xlu1 %1442  ;;  %v1462_v2 = vadd.f32 %v1437_v14, %v1414_v15  ;;  %v1493_v15 = vld [vmem:[#allocation4 + $0x50] sm:$0xff] }
 0x414   : > { %v1465_v35 = vadd.f32 %v1443_v57, %v1417_v55  ;;  %v1589_v14 = vmul.f32 %v3487_v21, %v1493_v15 }
 0x415   : > { %1479 = vst.msk [vmem:[#allocation3 + $0x30] sm:$0xff] %vm1472_vm2, %v1462_v2 }
 0x416   : > { %1482 = vst.msk [vmem:[#allocation3 + $0x48] sm:$0xff] %vm1472_vm2, %v1465_v35  ;;  %v1441_v51 = vpop.xlane.xlu0 %1440  ;;  %v1498_v35 = vld [vmem:[#allocation4 + $0x20] sm:$0xff] }
 0x417   : > { %v1447_v29 = vpop.xlane.xlu1 %1446  ;;  %v1464_v42 = vadd.f32 %v1441_v51, %v1416_v56  ;;  %v1594_v12 = vmul.f32 %v3497_v52, %v1498_v35 }
 0x418   : > { %v1467_v40 = vadd.f32 %v1447_v29, %v1419_v45  ;;  %v1591_v45 = vmul.f32 %v3491_v39, %v1495_v38  ;;  %v1502_v39 = vld [vmem:[#allocation4 + $0x70] sm:$0xff] }
 0x419   : > { %1481 = vst.msk [vmem:[#allocation3 + $0x40] sm:$0xff] %vm1472_vm2, %v1464_v42  ;;  %v1500_v42 = vld [vmem:[#allocation4 + $0x38] sm:$0xff] }
 0x41a   : > { %1484 = vst.msk [vmem:[#allocation3 + $0x58] sm:$0xff] %vm1472_vm2, %v1467_v40  ;;  %v1445_v7 = vpop.xlane.xlu0 %1444  ;;  %v1593_v40 = vmul.f32 %v3495_v1, %v1497_v26  ;;  %v1596_v54 = vmul.f32 %v3501_v43, %v1500_v42 }
 0x41b   : > { %v1451_v53 = vpop.xlane.xlu1 %1450  ;;  %v1466_v25 = vadd.f32 %v1445_v7, %v1418_v8 }
 0x41c   : > { %v1469_v16 = vadd.f32 %v1451_v53, %v1421_v62  ;;  %v1499_v62 = vld [vmem:[#allocation4 + $0x10] sm:$0xff] }
 0x41d   : > { %1483 = vst.msk [vmem:[#allocation3 + $0x50] sm:$0xff] %vm1472_vm2, %v1466_v25  ;;  %v1595_v25 = vmul.f32 %v3499_v20, %v1499_v62 }
 0x41e   : > { %1486 = vst.msk [vmem:[#allocation3 + $0x68] sm:$0xff] %vm1472_vm2, %v1469_v16  ;;  %v1449_v17 = vpop.xlane.xlu0 %1448 }
 0x41f   : > { %v1455_v63 = vpop.xlane.xlu1 %1454  ;;  %v1468_v60 = vadd.f32 %v1449_v17, %v1420_v27  ;;  %v1598_v27 = vmul.f32 %v3506_v5, %v1502_v39 }
 0x420   : > { %v1471_v24 = vadd.f32 %v1455_v63, %v1423_v28  ;;  %v1504_v28 = vld [vmem:[#allocation4 + $0x28] sm:$0xff]  ;;  %v1597_v63 = vmul.f32 %v3503_v6, %v1501_v19 }
 0x421   : > { %1485 = vst.msk [vmem:[#allocation3 + $0x60] sm:$0xff] %vm1472_vm2, %v1468_v60  ;;  %v1503_v60 = vld [vmem:[#allocation4 + $0x78] sm:$0xff] }
 0x422   : > { %1488 = vst.msk [vmem:[#allocation3 + $0x78] sm:$0xff] %vm1472_vm2, %v1471_v24  ;;  %v1453_v32 = vpop.xlane.xlu0 %1452 }
 0x423   : > { %v1470_v4 = vadd.f32 %v1453_v32, %v1422_v44  ;;  %v1578_v24 = vpop.permute.xlu1 %1577 }
 0x424   : > { %v1599_v46 = vmul.f32 %v1578_v24, %v1503_v60 }
 0x425   : > { %1487 = vst.msk [vmem:[#allocation3 + $0x70] sm:$0xff] %vm1472_vm2, %v1470_v4 }
 0x42a   : > { %v1583_v17 = vpop.permute.xlu0 %1582 }
 0x42b   : > { %v1600_v32 = vmul.f32 %v1583_v17, %v1504_v28 }
 0x431   : > { %v2544_v41 = vpop.f32.mrf.mxu1 }
 0x432   : > { %v1747_v18 = vadd.f32 %v2544_v41, %v1586_v50 }
 0x433   : > { %v1667_v22 = vpop.f32.mrf.mxu1 }
 0x434   : > { %1763 = vst [vmem:[#allocation4] sm:$0xff] %v1747_v18  ;;  %v1746_v59 = vadd.f32 %v1667_v22, %v1585_v11 }
 0x436   : > { %1762 = vst [vmem:[#allocation4 + $0x30] sm:$0xff] %v1746_v59 }
 0x43a   : > { %v2547_v31 = vpop.f32.mrf.mxu1 }
 0x43b   : > { %v1749_v23 = vadd.f32 %v2547_v31, %v1588_v36 }
 0x43c   : > { %v1677_v10 = vpop.f32.mrf.mxu1 }
 0x43d   : > { %1765 = vst [vmem:[#allocation4 + $0x18] sm:$0xff] %v1749_v23  ;;  %v1748_v33 = vadd.f32 %v1677_v10, %v1587_v58 }
 0x43f   : > { %1764 = vst [vmem:[#allocation4 + $0x58] sm:$0xff] %v1748_v33 }
 0x442   : > { %v2550_v55 = vpop.f32.mrf.mxu1 }
 0x443   : > { %v1751_v34 = vadd.f32 %v2550_v55, %v1590_v61 }
 0x444   : > { %v1687_v57 = vpop.f32.mrf.mxu1 }
 0x445   : > { %1767 = vst [vmem:[#allocation4 + $0x68] sm:$0xff] %v1751_v34  ;;  %v1750_v2 = vadd.f32 %v1687_v57, %v1589_v14 }
 0x447   : > { %1766 = vst [vmem:[#allocation4 + $0x50] sm:$0xff] %v1750_v2 }
 0x44a   : > { %v2553_v56 = vpop.f32.mrf.mxu1 }
 0x44b   : > { %v1753_v51 = vadd.f32 %v2553_v56, %v1592_v13 }
 0x44c   : > { %v1697_v29 = vpop.f32.mrf.mxu1 }
 0x44d   : > { %1769 = vst [vmem:[#allocation4 + $0x48] sm:$0xff] %v1753_v51  ;;  %v1752_v21 = vadd.f32 %v1697_v29, %v1591_v45 }
 0x44e   : > { %v2556_v47 = vpop.f32.mrf.mxu1 }
 0x44f   : > { %1768 = vst [vmem:[#allocation4 + $0x8] sm:$0xff] %v1752_v21  ;;  %v1755_v8 = vadd.f32 %v2556_v47, %v1594_v12 }
 0x450   : > { %v1707_v7 = vpop.f32.mrf.mxu1 }
 0x451   : > { %1771 = vst [vmem:[#allocation4 + $0x20] sm:$0xff] %v1755_v8  ;;  %v1754_v37 = vadd.f32 %v1707_v7, %v1593_v40 }
 0x452   : > { %v2559_v53 = vpop.f32.mrf.mxu1 }
 0x453   : > { %1770 = vst [vmem:[#allocation4 + $0x40] sm:$0xff] %v1754_v37  ;;  %v1757_v52 = vadd.f32 %v2559_v53, %v1596_v54 }
 0x454   : > { %v1717_v16 = vpop.f32.mrf.mxu1 }
 0x455   : > { %1773 = vst [vmem:[#allocation4 + $0x38] sm:$0xff] %v1757_v52  ;;  %v1756_v1 = vadd.f32 %v1717_v16, %v1595_v25 }
 0x456   : > { %v2562_v30 = vpop.f32.mrf.mxu1 }
 0x457   : > { %1772 = vst [vmem:[#allocation4 + $0x10] sm:$0xff] %v1756_v1  ;;  %v1759_v43 = vadd.f32 %v2562_v30, %v1598_v27 }
 0x458   : > { %v1727_v44 = vpop.f32.mrf.mxu1 }
 0x459   : > { %1775 = vst [vmem:[#allocation4 + $0x70] sm:$0xff] %v1759_v43  ;;  %v1758_v20 = vadd.f32 %v1727_v44, %v1597_v63 }
 0x45a   : > { %v2565_v4 = vpop.f32.mrf.mxu1 }
 0x45b   : > { %1774 = vst [vmem:[#allocation4 + $0x60] sm:$0xff] %v1758_v20  ;;  %v1761_v3 = vadd.f32 %v2565_v4, %v1600_v32  ;;  %1797 = sbr.rel (%p2171_p13) target bundleno = 1299 (0x513), region = 89 }
 0x45c   : > { %v1737_v5 = vpop.f32.mrf.mxu1 }
 0x45d   : > { %1777 = vst [vmem:[#allocation4 + $0x28] sm:$0xff] %v1761_v3  ;;  %v1760_v50 = vadd.f32 %v1737_v5, %v1599_v46 }
 0x45f   : > { %1776 = vst [vmem:[#allocation4 + $0x78] sm:$0xff] %v1760_v50 }
 0x460   : > { %v1800_v6 = vld [vmem:[#allocation3 + $0x10] sm:$0xff]  ;;  %v1798_v41 = vld [vmem:[#allocation3] sm:$0xff]  ;;  %v1801_v11 = vld [vmem:[#allocation3 + $0x18] sm:$0xff]  ;;  %v2785_v18 = vmov 0  }
 0x461   : > { %2693 = vset.pattern.permute.xlu1 %v2785_v18  ;;  %2692 = vset.pattern.permute.xlu0 %v2785_v18  ;;  %2694 = vrcp.f32 %v1800_v6  ;;  %v1799_v22 = vld [vmem:[#allocation3 + $0x8] sm:$0xff]  ;;  %v1802_v48 = vld [vmem:[#allocation3 + $0x20] sm:$0xff]  ;;  %v1805_v0 = vld [vmem:[#allocation3 + $0x38] sm:$0xff] }
 0x462   : > { %2696 = vrcp.f32 %v1798_v41  ;;  %v1803_v59 = vld [vmem:[#allocation3 + $0x28] sm:$0xff]  ;;  %v1804_v36 = vld [vmem:[#allocation3 + $0x30] sm:$0xff]  ;;  %v1806_v58 = vld [vmem:[#allocation3 + $0x40] sm:$0xff] }
 0x463   : > { %2698 = vrcp.f32 %v1801_v11  ;;  %v1807_v31 = vld [vmem:[#allocation3 + $0x48] sm:$0xff]  ;;  %v1809_v23 = vld [vmem:[#allocation3 + $0x58] sm:$0xff]  ;;  %v1808_v10 = vld [vmem:[#allocation3 + $0x50] sm:$0xff] }
 0x464   : > { %2700 = vrcp.f32 %v1799_v22  ;;  %v1811_v49 = vld [vmem:[#allocation3 + $0x68] sm:$0xff]  ;;  %v1810_v55 = vld [vmem:[#allocation3 + $0x60] sm:$0xff]  ;;  %v1813_v56 = vld [vmem:[#allocation3 + $0x78] sm:$0xff] }
 0x465   : > { %2702 = vrcp.f32 %v1803_v59  ;;  %v1812_v12 = vld [vmem:[#allocation3 + $0x70] sm:$0xff] }
 0x466   : > { %2704 = vrcp.f32 %v1802_v48 }
 0x467   : > { %2706 = vrcp.f32 %v1805_v0 }
 0x468   : > { %2708 = vrcp.f32 %v1804_v36 }
 0x469   : > { %2710 = vrcp.f32 %v1807_v31 }
 0x46a   : > { %2712 = vrcp.f32 %v1806_v58 }
 0x46b   : > { %2714 = vrcp.f32 %v1809_v23 }
 0x46c   : > { %2716 = vrcp.f32 %v1808_v10 }
 0x46d   : > { %2718 = vrcp.f32 %v1811_v49 }
 0x46e   : > { %v2695_v33 = vpop.eup %2694  ;;  %2720 = vrcp.f32 %v1810_v55 }
 0x46f   : > { %v2697_v15 = vpop.eup %2696  ;;  %v1832_v61 = vmul.f32 %v2695_v33, %v1800_v6  ;;  %2722 = vrcp.f32 %v1813_v56 }
 0x470   : > { %v2699_v14 = vpop.eup %2698  ;;  %v1830_v34 = vmul.f32 %v2697_v15, %v1798_v41  ;;  %2724 = vrcp.f32 %v1812_v12 }
 0x471   : > { %v2701_v57 = vpop.eup %2700  ;;  %v1848_v2 = vsub.f32 2.0, %v1832_v61  ;;  %v1833_v9 = vmul.f32 %v2699_v14, %v1801_v11 }
 0x472   : > { %v2703_v38 = vpop.eup %2702  ;;  %v1846_v13 = vsub.f32 2.0, %v1830_v34  ;;  %v1831_v35 = vmul.f32 %v2701_v57, %v1799_v22 }
 0x473   : > { %v2705_v45 = vpop.eup %2704  ;;  %v1864_v51 = vmul.f32 %v2695_v33, %v1848_v2  ;;  %v1849_v26 = vsub.f32 2.0, %v1833_v9  ;;  %v1835_v29 = vmul.f32 %v2703_v38, %v1803_v59 }
 0x474   : > { %v2707_v21 = vpop.eup %2706  ;;  %v1862_v42 = vmul.f32 %v2697_v15, %v1846_v13  ;;  %v1847_v47 = vsub.f32 2.0, %v1831_v35  ;;  %v1834_v40 = vmul.f32 %v2705_v45, %v1802_v48  ;;  %v1879_v35 = vld [vmem:[#allocation4] sm:$0xff] }
 0x475   : > { %v2709_v8 = vpop.eup %2708  ;;  %1906 = vperm.xlu1 %2693, %v1864_v51   ;;  %v1865_v62 = vmul.f32 %v2699_v14, %v1849_v26  ;;  %v1851_v7 = vsub.f32 2.0, %v1835_v29  ;;  %v1837_v54 = vmul.f32 %v2707_v21, %v1805_v0  ;;  %v1878_v14 = vld [vmem:[#allocation4 + $0x30] sm:$0xff] }
 0x476   : > { %v2711_v37 = vpop.eup %2710  ;;  %1896 = vperm.xlu0 %2692, %v1862_v42   ;;  %v1863_v39 = vmul.f32 %v2701_v57, %v1847_v47  ;;  %v1850_v53 = vsub.f32 2.0, %v1834_v40  ;;  %v1836_v25 = vmul.f32 %v2709_v8, %v1804_v36  ;;  %v1882_v42 = vld [vmem:[#allocation4 + $0x50] sm:$0xff] }
 0x477   : > { %v2713_v52 = vpop.eup %2712  ;;  %v1867_v19 = vmul.f32 %v2703_v38, %v1851_v7  ;;  %v1853_v16 = vsub.f32 2.0, %v1837_v54  ;;  %v1839_v27 = vmul.f32 %v2711_v37, %v1807_v31  ;;  %v1881_v38 = vld [vmem:[#allocation4 + $0x18] sm:$0xff]  ;;  %v1885_v54 = vld [vmem:[#allocation4 + $0x48] sm:$0xff] }
 0x478   : > { %v2715_v1 = vpop.eup %2714  ;;  %v1866_v28 = vmul.f32 %v2705_v45, %v1850_v53  ;;  %v1852_v17 = vsub.f32 2.0, %v1836_v25  ;;  %v1838_v30 = vmul.f32 %v2713_v52, %v1806_v58 }
 0x479   : > { %1911 = vperm.xlu1 %2693, %v1865_v62   ;;  %v2717_v63 = vpop.eup %2716  ;;  %v1869_v43 = vmul.f32 %v2707_v21, %v1853_v16  ;;  %v1855_v60 = vsub.f32 2.0, %v1839_v27  ;;  %v1841_v24 = vmul.f32 %v2715_v1, %v1809_v23  ;;  %v1887_v27 = vld [vmem:[#allocation4 + $0x20] sm:$0xff] }
 0x47a   : > { %1901 = vperm.xlu0 %2692, %v1863_v39   ;;  %v2719_v44 = vpop.eup %2718  ;;  %v1868_v32 = vmul.f32 %v2709_v8, %v1852_v17  ;;  %v1854_v20 = vsub.f32 2.0, %v1838_v30  ;;  %v1840_v4 = vmul.f32 %v2717_v63, %v1808_v10  ;;  %v1884_v39 = vld [vmem:[#allocation4 + $0x8] sm:$0xff] }
 0x47b   : > { %v2721_v46 = vpop.eup %2720  ;;  %v1871_v3 = vmul.f32 %v2711_v37, %v1855_v60  ;;  %v1857_v5 = vsub.f32 2.0, %v1841_v24  ;;  %v1843_v50 = vmul.f32 %v2719_v44, %v1811_v49  ;;  %v1889_v24 = vld [vmem:[#allocation4 + $0x38] sm:$0xff] }
 0x47c   : > { %v2723_v6 = vpop.eup %2722  ;;  %v1870_v41 = vmul.f32 %v2713_v52, %v1854_v20  ;;  %v1856_v11 = vsub.f32 2.0, %v1840_v4  ;;  %v1842_v18 = vmul.f32 %v2721_v46, %v1810_v55  ;;  %v1880_v55 = vld [vmem:[#allocation4 + $0x58] sm:$0xff] }
 0x47d   : > { %1921 = vperm.xlu1 %2693, %v1867_v19   ;;  %v2725_v22 = vpop.eup %2724  ;;  %v1873_v59 = vmul.f32 %v2715_v1, %v1857_v5  ;;  %v1859_v48 = vsub.f32 2.0, %v1843_v50  ;;  %v1845_v0 = vmul.f32 %v2723_v6, %v1813_v56  ;;  %v1891_v50 = vld [vmem:[#allocation4 + $0x70] sm:$0xff] }
 0x47e   : > { %1916 = vperm.xlu0 %2692, %v1866_v28   ;;  %v1872_v36 = vmul.f32 %v2717_v63, %v1856_v11  ;;  %v1858_v31 = vsub.f32 2.0, %v1842_v18  ;;  %v1844_v58 = vmul.f32 %v2725_v22, %v1812_v12  ;;  %v1883_v12 = vld [vmem:[#allocation4 + $0x68] sm:$0xff]  ;;  %v1886_v28 = vld [vmem:[#allocation4 + $0x40] sm:$0xff] }
 0x47f   : > { %v1875_v23 = vmul.f32 %v2719_v44, %v1859_v48  ;;  %v1861_v10 = vsub.f32 2.0, %v1845_v0  ;;  %v1893_v0 = vld [vmem:[#allocation4 + $0x28] sm:$0xff] }
 0x480   : > { %v1874_v33 = vmul.f32 %v2721_v46, %v1858_v31  ;;  %v1860_v49 = vsub.f32 2.0, %v1844_v58  ;;  %v1892_v31 = vld [vmem:[#allocation4 + $0x78] sm:$0xff] }
 0x481   : > { %1931 = vperm.xlu1 %2693, %v1869_v43   ;;  %v1877_v15 = vmul.f32 %v2723_v6, %v1861_v10 }
 0x482   : > { %1926 = vperm.xlu0 %2692, %v1868_v32   ;;  %v1876_v61 = vmul.f32 %v2725_v22, %v1860_v49  ;;  %v1888_v32 = vld [vmem:[#allocation4 + $0x10] sm:$0xff] }
 0x485   : > { %1941 = vperm.xlu1 %2693, %v1871_v3  }
 0x486   : > { %1936 = vperm.xlu0 %2692, %v1870_v41   ;;  %v1890_v41 = vld [vmem:[#allocation4 + $0x60] sm:$0xff] }
 0x489   : > { %1951 = vperm.xlu1 %2693, %v1873_v59  }
 0x48a   : > { %1946 = vperm.xlu0 %2692, %v1872_v36  }
 0x48d   : > { %1961 = vperm.xlu1 %2693, %v1875_v23  }
 0x48e   : > { %1956 = vperm.xlu0 %2692, %v1874_v33  }
 0x491   : > { %1971 = vperm.xlu1 %2693, %v1877_v15  }
 0x492   : > { %1966 = vperm.xlu0 %2692, %v1876_v61  }
 0x4f0   : > { %v1907_v34 = vpop.permute.xlu1 %1906 }
 0x4f1   : > { %v1976_v57 = vmul.f32 %v1907_v34, %v1880_v55  ;;  %v1897_v2 = vpop.permute.xlu0 %1896 }
 0x4f2   : > { %v1974_v9 = vmul.f32 %v1897_v2, %v1878_v14 }
 0x4f3   : > { %v1992_v13 = vmax.f32 %v1976_v57, 0.0 }
 0x4f4   : > { %v1990_v56 = vmax.f32 %v1974_v9, 0.0  ;;  %v1912_v45 = vpop.permute.xlu1 %1911 }
 0x4f5   : > { %2008 = vst [vmem:[%s2907_s11 + $0x10] sm:$0xff] %v1992_v13  ;;  %v1977_v51 = vmul.f32 %v1912_v45, %v1881_v38  ;;  %v1902_v26 = vpop.permute.xlu0 %1901 }
 0x4f6   : > { %2006 = vst [vmem:[%s2907_s11] sm:$0xff] %v1990_v56  ;;  %v1975_v29 = vmul.f32 %v1902_v26, %v1879_v35 }
 0x4f7   : > { %v1993_v21 = vmax.f32 %v1977_v51, 0.0 }
 0x4f8   : > { %v1991_v47 = vmax.f32 %v1975_v29, 0.0  ;;  %v1922_v40 = vpop.permute.xlu1 %1921 }
 0x4f9   : > { %2009 = vst [vmem:[%s2907_s11 + $0x18] sm:$0xff] %v1993_v21  ;;  %v1979_v8 = vmul.f32 %v1922_v40, %v1883_v12  ;;  %v1917_v62 = vpop.permute.xlu0 %1916 }
 0x4fa   : > { %2007 = vst [vmem:[%s2907_s11 + $0x8] sm:$0xff] %v1991_v47  ;;  %v1978_v7 = vmul.f32 %v1917_v62, %v1882_v42 }
 0x4fb   : > { %v1995_v37 = vmax.f32 %v1979_v8, 0.0 }
 0x4fc   : > { %v1994_v53 = vmax.f32 %v1978_v7, 0.0  ;;  %v1932_v25 = vpop.permute.xlu1 %1931 }
 0x4fd   : > { %2011 = vst [vmem:[%s2907_s11 + $0x28] sm:$0xff] %v1995_v37  ;;  %v1981_v52 = vmul.f32 %v1932_v25, %v1885_v54  ;;  %v1927_v19 = vpop.permute.xlu0 %1926 }
 0x4fe   : > { %2010 = vst [vmem:[%s2907_s11 + $0x20] sm:$0xff] %v1994_v53  ;;  %v1980_v16 = vmul.f32 %v1927_v19, %v1884_v39 }
 0x4ff   : > { %v1997_v1 = vmax.f32 %v1981_v52, 0.0 }
 0x500   : > { %v1996_v17 = vmax.f32 %v1980_v16, 0.0  ;;  %v1942_v30 = vpop.permute.xlu1 %1941 }
 0x501   : > { %2013 = vst [vmem:[%s2907_s11 + $0x38] sm:$0xff] %v1997_v1  ;;  %v1983_v63 = vmul.f32 %v1942_v30, %v1887_v27  ;;  %v1937_v43 = vpop.permute.xlu0 %1936 }
 0x502   : > { %2012 = vst [vmem:[%s2907_s11 + $0x30] sm:$0xff] %v1996_v17  ;;  %v1982_v60 = vmul.f32 %v1937_v43, %v1886_v28 }
 0x503   : > { %v1999_v44 = vmax.f32 %v1983_v63, 0.0 }
 0x504   : > { %v1998_v20 = vmax.f32 %v1982_v60, 0.0  ;;  %v1952_v4 = vpop.permute.xlu1 %1951 }
 0x505   : > { %2015 = vst [vmem:[%s2907_s11 + $0x48] sm:$0xff] %v1999_v44  ;;  %v1985_v46 = vmul.f32 %v1952_v4, %v1889_v24  ;;  %v1947_v3 = vpop.permute.xlu0 %1946 }
 0x506   : > { %2014 = vst [vmem:[%s2907_s11 + $0x40] sm:$0xff] %v1998_v20  ;;  %v1984_v5 = vmul.f32 %v1947_v3, %v1888_v32 }
 0x507   : > { %v2001_v6 = vmax.f32 %v1985_v46, 0.0 }
 0x508   : > { %v2000_v11 = vmax.f32 %v1984_v5, 0.0  ;;  %v1962_v18 = vpop.permute.xlu1 %1961 }
 0x509   : > { %2017 = vst [vmem:[%s2907_s11 + $0x58] sm:$0xff] %v2001_v6  ;;  %v1987_v22 = vmul.f32 %v1962_v18, %v1891_v50  ;;  %v1957_v59 = vpop.permute.xlu0 %1956 }
 0x50a   : > { %2016 = vst [vmem:[%s2907_s11 + $0x50] sm:$0xff] %v2000_v11  ;;  %v1986_v48 = vmul.f32 %v1957_v59, %v1890_v41 }
 0x50b   : > { %v2003_v36 = vmax.f32 %v1987_v22, 0.0 }
 0x50c   : > { %v2002_v58 = vmax.f32 %v1986_v48, 0.0  ;;  %v1972_v23 = vpop.permute.xlu1 %1971 }
 0x50d   : > { %2019 = vst [vmem:[%s2907_s11 + $0x68] sm:$0xff] %v2003_v36  ;;  %v1989_v10 = vmul.f32 %v1972_v23, %v1893_v0  ;;  %v1967_v33 = vpop.permute.xlu0 %1966 }
 0x50e   : > { %2018 = vst [vmem:[%s2907_s11 + $0x60] sm:$0xff] %v2002_v58  ;;  %v1988_v49 = vmul.f32 %v1967_v33, %v1892_v31 }
 0x50f   : > { %v2005_v15 = vmax.f32 %v1989_v10, 0.0 }
 0x510   : > { %v2004_v61 = vmax.f32 %v1988_v49, 0.0 }
 0x511   : > { %2021 = vst [vmem:[%s2907_s11 + $0x78] sm:$0xff] %v2005_v15 }
 0x512   : > { %2020 = vst [vmem:[%s2907_s11 + $0x70] sm:$0xff] %v2004_v61 }
 0x513 PF: > { %s15_s24 = sadd.s32 1, %s2780_s24   ;;  %s3614_s18 = smov %s2760_s19 }
 0x514   : > { %p12_p0 = scmp.ge.s32.totalorder %s15_s24, 18   ;;  %s3615_s19 = smov %s2867_s6 }
 0x515   : > { %s3616_s20 = smov %s2772_s22  ;;  %s3617_s21 = smov %s2776_s23 }
 0x516   : > { %s3618_s22 = smov %s3621_s25  ;;  %s3619_s23 = smov %s3625_s26 }
 0x517   :  { %14 = sbr.rel (!%p12_p0) target bundleno = 4 (0x4), region = 130 }

</bundles_post_ra>
